<compile_context>
chip_gen: v7x
topology: tpu7x:2x2x1
jax: 0.10.0
libtpu: 0.0.40
codegen_flags: <defaults>
</compile_context>

<pallas_src>
import jax
import jax.numpy as jnp
from jax.experimental import pallas as pl
from jax.experimental.pallas import tpu as pltpu

# ----------------------------- small config ---------------------------------
VOCAB = 64
D_MODEL = 32          # stands in for 768
N_HEAD = 2
D_HEAD = D_MODEL // N_HEAD
D_FF = 64
N_LAYER = 2
MAX_LEN = 8
BATCH = 2
N_CLASSES = 2
LN_EPS = 1e-12
INIT_STD = 0.02

# Row layout of the packed per-layer vector operand, shape (L, VEC_ROWS, 128).
ROW_LN1_G, ROW_LN1_B, ROW_LN2_G, ROW_LN2_B = 0, 1, 2, 3
ROW_BO, ROW_B1, ROW_B2 = 4, 5, 6
ROW_BQ, ROW_BK, ROW_BV = 7, 9, 11      # two rows each (one per head)
ROW_FCB = 13                           # classifier bias, stored at layer 0
VEC_ROWS = 16


# ----------------------------- fused kernel ---------------------------------
def _layernorm(x, g, b):
    mu = jnp.mean(x, axis=-1, keepdims=True)
    var = jnp.mean((x - mu) * (x - mu), axis=-1, keepdims=True)
    return (x - mu) * jax.lax.rsqrt(var + LN_EPS) * g + b


def _xlnet_fused_kernel(ids_ref, emb_ref, wattn_ref, wffn_ref, vec_ref,
                        bias_ref, fcw_ref, out_ref):
    """Whole forward pass in one kernel invocation (no grid).

    Refs:
      ids_ref   : (B*S, 1)  int32 token ids (token-major, row n = b*S + s)
      emb_ref   : (VOCAB, D) bf16 embedding table
      wattn_ref : (L*4*H, Dh, D) bf16 — per-head Wq^T/Wk^T/Wv^T and Wo row-blocks
      wffn_ref  : (L*2, F, D) bf16 — [W1^T, W2] per layer
      vec_ref   : (L, 16, 128) f32 — packed biases / LayerNorm params / fc bias
      bias_ref  : (L*H, S, S) f32 — relative-position bias
      fcw_ref   : (B*S, C, D) bf16 — classifier weight, per-position, batch-tiled
      out_ref   : (B, C) f32 logits
    """
    bs = BATCH * MAX_LEN
    bf16 = jnp.bfloat16
    f32 = jnp.float32

    def vrow(li, row, width):
        # (1, width) f32 slab from the packed vector operand; all-static indices.
        return vec_ref[li, row:row + 1, 0:width]

    # --- embedding lookup as a one-hot matmul (exact gather, MXU-friendly) ---
    ids = ids_ref[...]                                               # (bs, 1) i32
    vocab_iota = jax.lax.broadcasted_iota(jnp.int32, (bs, VOCAB), 1)
    one_hot = (vocab_iota == ids).astype(bf16)                       # (bs, VOCAB)
    h = jnp.dot(one_hot, emb_ref[...], preferred_element_type=f32)   # (bs, D) f32

    # --- encoder layers (statically unrolled) ---
    for li in range(N_LAYER):
        h_bf = h.astype(bf16)
        attn = None
        for hd in range(N_HEAD):
            # Per-head weights live on a LEADING axis of the pack: free indexing,
            # no lane-offset slicing of activations anywhere.
            wq = wattn_ref[(li * 4 + 0) * N_HEAD + hd]               # (Dh, D)
            wk = wattn_ref[(li * 4 + 1) * N_HEAD + hd]
            wv = wattn_ref[(li * 4 + 2) * N_HEAD + hd]
            wo = wattn_ref[(li * 4 + 3) * N_HEAD + hd]

            # 1/sqrt(Dh) is pre-folded into wq (and bq) at prep time.
            q = jnp.einsum('nd,kd->nk', h_bf, wq,
                           preferred_element_type=f32) + vrow(li, ROW_BQ + hd, D_HEAD)
            k = jnp.einsum('nd,kd->nk', h_bf, wk,
                           preferred_element_type=f32) + vrow(li, ROW_BK + hd, D_HEAD)
            v = jnp.einsum('nd,kd->nk', h_bf, wv,
                           preferred_element_type=f32) + vrow(li, ROW_BV + hd, D_HEAD)

            q3 = q.reshape(BATCH, MAX_LEN, D_HEAD)
            k3 = k.reshape(BATCH, MAX_LEN, D_HEAD)
            v3 = v.reshape(BATCH, MAX_LEN, D_HEAD)

            s = jnp.einsum('bqd,bkd->bqk', q3.astype(bf16), k3.astype(bf16),
                           preferred_element_type=f32)               # (B,S,S) f32
            # learned relative-position bias, broadcast over batch in-register
            s = s + bias_ref[li * N_HEAD + hd][None, :, :]
            m = jnp.max(s, axis=-1, keepdims=True)
            p = jnp.exp(s - m)
            denom = jnp.sum(p, axis=-1, keepdims=True)
            p = p * pl.reciprocal(denom, approx=True)                # EUP slot
            ctx3 = jnp.einsum('bqk,bkd->bqd', p.astype(bf16), v3.astype(bf16),
                              preferred_element_type=f32)            # (B,S,Dh)
            ctx = ctx3.reshape(bs, D_HEAD)

            # Fold the output projection per head: no lane concat needed.
            a_h = jnp.dot(ctx.astype(bf16), wo, preferred_element_type=f32)
            attn = a_h if attn is None else attn + a_h               # (bs, D) f32

        attn = attn + vrow(li, ROW_BO, D_MODEL)
        h = _layernorm(h + attn,
                       vrow(li, ROW_LN1_G, D_MODEL), vrow(li, ROW_LN1_B, D_MODEL))

        # FFN + residual + post-LN.  W1 is stored transposed (F, D); W2 as (F, D).
        # NOTE: tanh-approx GELU (jax.nn.gelu default); HF XLNet uses erf GELU.
        h_bf = h.astype(bf16)
        f = jnp.einsum('nd,fd->nf', h_bf, wffn_ref[li * 2 + 0],
                       preferred_element_type=f32)
        f = jax.nn.gelu(f + vrow(li, ROW_B1, D_FF))
        g = jnp.dot(f.astype(bf16), wffn_ref[li * 2 + 1],
                    preferred_element_type=f32)
        g = g + vrow(li, ROW_B2, D_MODEL)
        h = _layernorm(h + g,
                       vrow(li, ROW_LN2_G, D_MODEL), vrow(li, ROW_LN2_B, D_MODEL))

    # --- dropout = identity (eval mode); flatten + classifier, fused ---
    # logits[b, c] = sum_{s,d} h[b*S+s, d] * fc_w[s*D+d, c] + fc_b[c]
    # Implemented without any (B, S*D) flatten:
    #   k_tok[n, 0, c] = sum_d h[n, d] * fcw_tiled[n, c, d]   (leading-batch MXU
    #   einsum, same pattern as the attention score einsum), then sum over S.
    k_tok = jnp.einsum('nqd,ncd->nqc', h.astype(bf16)[:, None, :], fcw_ref[...],
                       preferred_element_type=f32)                   # (bs, 1, C)
    k3 = k_tok.reshape(BATCH, MAX_LEN, N_CLASSES)                    # (B, S, C)
    logits = jnp.sum(k3, axis=1)                                     # (B, C)
    out_ref[...] = logits + vec_ref[0, ROW_FCB:ROW_FCB + 1, 0:N_CLASSES]


# ----------------------------- parameter init --------------------------------
def init_params(key):
    def nrm(k, shape, std=INIT_STD):
        return std * jax.random.normal(k, shape, dtype=jnp.float32)

    ks = jax.random.split(key, 9)
    L = N_LAYER
    z = lambda shape: jnp.zeros(shape, jnp.float32)
    return {
        "word_emb": nrm(ks[0], (VOCAB, D_MODEL)),
        "wq": nrm(ks[1], (L, D_MODEL, D_MODEL)),
        "wk": nrm(ks[2], (L, D_MODEL, D_MODEL)),
        "wv": nrm(ks[3], (L, D_MODEL, D_MODEL)),
        "wo": nrm(ks[4], (L, D_MODEL, D_MODEL)),
        "bq": z((L, D_MODEL)), "bk": z((L, D_MODEL)),
        "bv": z((L, D_MODEL)), "bo": z((L, D_MODEL)),
        # learned relative-position bias over distances [-(S-1), S-1]
        "rel_bias": nrm(ks[5], (L, N_HEAD, 2 * MAX_LEN - 1)),
        "ln1_g": jnp.ones((L, D_MODEL), jnp.float32), "ln1_b": z((L, D_MODEL)),
        "w1": nrm(ks[6], (L, D_MODEL, D_FF)), "b1": z((L, D_FF)),
        "w2": nrm(ks[7], (L, D_FF, D_MODEL)), "b2": z((L, D_MODEL)),
        "ln2_g": jnp.ones((L, D_MODEL), jnp.float32), "ln2_b": z((L, D_MODEL)),
        # classifier: Linear(S * D_MODEL, 2)
        "fc_w": nrm(ks[8], (MAX_LEN * D_MODEL, N_CLASSES)),
        "fc_b": z((N_CLASSES,)),
    }


# -------------------- one-time kernel-ready parameter packing ----------------
def prepare_params(p):
    """Hoisted out of the per-call path: run ONCE, reuse the result every call."""
    L, H, Dh, D, F = N_LAYER, N_HEAD, D_HEAD, D_MODEL, D_FF
    scale = 1.0 / float(D_HEAD) ** 0.5

    def per_head_t(w):  # (L, D, D) -> (L, H, Dh, D): head-h output block, transposed
        return w.reshape(L, D, H, Dh).transpose(0, 2, 3, 1)

    wq_h = per_head_t(p["wq"]) * scale          # fold 1/sqrt(Dh) into Wq
    wk_h = per_head_t(p["wk"])
    wv_h = per_head_t(p["wv"])
    wo_h = p["wo"].reshape(L, H, Dh, D)         # Wo row-block for head h
    w_attn = (jnp.stack([wq_h, wk_h, wv_h, wo_h], axis=1)   # (L, 4, H, Dh, D)
              .reshape(L * 4 * H, Dh, D).astype(jnp.bfloat16))

    w_ffn = (jnp.stack([p["w1"].transpose(0, 2, 1), p["w2"]], axis=1)  # (L,2,F,D)
             .reshape(L * 2, F, D).astype(jnp.bfloat16))

    # Packed small vectors: one (L, 16, 128) f32 operand instead of 10 tiny ones.
    vec = jnp.zeros((L, VEC_ROWS, 128), jnp.float32)
    vec = vec.at[:, ROW_LN1_G, :D].set(p["ln1_g"])
    vec = vec.at[:, ROW_LN1_B, :D].set(p["ln1_b"])
    vec = vec.at[:, ROW_LN2_G, :D].set(p["ln2_g"])
    vec = vec.at[:, ROW_LN2_B, :D].set(p["ln2_b"])
    vec = vec.at[:, ROW_BO, :D].set(p["bo"])
    vec = vec.at[:, ROW_B1, :F].set(p["b1"])
    vec = vec.at[:, ROW_B2, :D].set(p["b2"])
    bq_h = p["bq"].reshape(L, H, Dh) * scale
    bk_h = p["bk"].reshape(L, H, Dh)
    bv_h = p["bv"].reshape(L, H, Dh)
    for hd in range(H):
        vec = vec.at[:, ROW_BQ + hd, :Dh].set(bq_h[:, hd])
        vec = vec.at[:, ROW_BK + hd, :Dh].set(bk_h[:, hd])
        vec = vec.at[:, ROW_BV + hd, :Dh].set(bv_h[:, hd])
    vec = vec.at[0, ROW_FCB, :N_CLASSES].set(p["fc_b"])

    # Relative-position bias tables expanded to (L*H, S, S) (no batch broadcast).
    idx = jnp.arange(MAX_LEN)
    rel = idx[:, None] - idx[None, :] + (MAX_LEN - 1)
    bias = p["rel_bias"][:, :, rel].reshape(L * H, MAX_LEN, MAX_LEN)

    # Classifier weight per position, tiled over batch: fcw[n, c, d] = fc_w[(n%S)*D+d, c]
    fcw_pos = p["fc_w"].reshape(MAX_LEN, D, N_CLASSES).transpose(0, 2, 1)  # (S,C,D)
    fcw = jnp.tile(fcw_pos, (BATCH, 1, 1)).astype(jnp.bfloat16)            # (B*S,C,D)

    return {"emb": p["word_emb"].astype(jnp.bfloat16),
            "w_attn": w_attn, "w_ffn": w_ffn, "vec": vec,
            "bias": bias, "fcw": fcw}


# ----------------------------- forward pass ----------------------------------
# TODO(synk): full XLNet two-stream relative attention (rel-shift + sinusoidal
# position projections) is replaced by a learned relative-position bias; the
# pretrained checkpoint is replaced by deterministic synthetic weights.
def model_forward(ids, kp):
    B, S = ids.shape
    assert (B, S) == (BATCH, MAX_LEN)
    ids2 = ids.reshape(B * S, 1).astype(jnp.int32)

    logits = pl.pallas_call(
        _xlnet_fused_kernel,
        out_shape=jax.ShapeDtypeStruct((B, N_CLASSES), jnp.float32),
        compiler_params=pltpu.CompilerParams(vmem_limit_bytes=32 * 1024 * 1024),
    )(ids2, kp["emb"], kp["w_attn"], kp["w_ffn"], kp["vec"], kp["bias"],
      kp["fcw"])
    return logits                                                    # (B, 2)


# ----------------------------- main -------------------------------------------
if __name__ == "__main__":
    key = jax.random.PRNGKey(0)
    k_ids, k_params = jax.random.split(key)

    ids = jax.random.randint(k_ids, (BATCH, MAX_LEN), 0, VOCAB, dtype=jnp.int32)
    params = init_params(k_params)

    # One-time packing of kernel-ready parameters (outside the per-call path).
    kparams = jax.block_until_ready(prepare_params(params))

    fwd = jax.jit(model_forward)
    logits = jax.block_until_ready(fwd(ids, kparams))

    assert logits.shape == (BATCH, N_CLASSES), logits.shape
    assert logits.dtype == jnp.float32
    assert bool(jnp.all(jnp.isfinite(logits)))
    print("KERNEL_OK")
</pallas_src>

<mosaic_0001>
module attributes {stable_mosaic.version = 11 : i64} {
  func.func @_xlnet_fused_kernel(%arg0: memref<16x1xi32, #tpu.memory_space<vmem>>, %arg1: memref<64x32xbf16, #tpu.memory_space<vmem>>, %arg2: memref<16x16x32xbf16, #tpu.memory_space<vmem>>, %arg3: memref<4x64x32xbf16, #tpu.memory_space<vmem>>, %arg4: memref<2x16x128xf32, #tpu.memory_space<vmem>>, %arg5: memref<4x8x8xf32, #tpu.memory_space<vmem>>, %arg6: memref<16x2x32xbf16, #tpu.memory_space<vmem>>, %arg7: memref<2x2xf32, #tpu.memory_space<vmem>>) attributes {dimension_semantics = [], scalar_prefetch = 0 : i64, scratch_operands = 0 : i64, tpu.core_type = #tpu.core_type<tc>} {
    %c0 = arith.constant 0 : index
    %c0_0 = arith.constant 0 : index
    %0 = vector.load %arg0[%c0, %c0_0] : memref<16x1xi32, #tpu.memory_space<vmem>>, vector<16x1xi32>
    %1 = tpu.iota {dimensions = array<i32: 1>} : vector<16x64xi32>
    %2 = vector.broadcast %0 : vector<16x1xi32> to vector<16x64xi32>
    %3 = arith.cmpi eq, %1, %2 : vector<16x64xi32>
    %4 = arith.extui %3 : vector<16x64xi1> to vector<16x64xi32>
    %5 = arith.sitofp %4 : vector<16x64xi32> to vector<16x64xf32>
    %6 = arith.truncf %5 : vector<16x64xf32> to vector<16x64xbf16>
    %c0_1 = arith.constant 0 : index
    %c0_2 = arith.constant 0 : index
    %7 = vector.load %arg1[%c0_1, %c0_2] : memref<64x32xbf16, #tpu.memory_space<vmem>>, vector<64x32xbf16>
    %cst = arith.constant dense<0.000000e+00> : vector<16x32xf32>
    %8 = tpu.matmul %6, %7, %cst {dimension_numbers = #tpu.dot_dimension_numbers<[1], [0], [0], [1], [0, 0, 1, 1], [], []>} : vector<16x64xbf16>, vector<64x32xbf16>, vector<16x32xf32> -> vector<16x32xf32>
    %9 = arith.truncf %8 : vector<16x32xf32> to vector<16x32xbf16>
    %c0_3 = arith.constant 0 : index
    %c0_4 = arith.constant 0 : index
    %c0_5 = arith.constant 0 : index
    %10 = vector.load %arg2[%c0_3, %c0_4, %c0_5] : memref<16x16x32xbf16, #tpu.memory_space<vmem>>, vector<1x16x32xbf16>
    %11 = vector.shape_cast %10 : vector<1x16x32xbf16> to vector<16x32xbf16>
    %c2 = arith.constant 2 : index
    %c0_6 = arith.constant 0 : index
    %c0_7 = arith.constant 0 : index
    %12 = vector.load %arg2[%c2, %c0_6, %c0_7] : memref<16x16x32xbf16, #tpu.memory_space<vmem>>, vector<1x16x32xbf16>
    %13 = vector.shape_cast %12 : vector<1x16x32xbf16> to vector<16x32xbf16>
    %c4 = arith.constant 4 : index
    %c0_8 = arith.constant 0 : index
    %c0_9 = arith.constant 0 : index
    %14 = vector.load %arg2[%c4, %c0_8, %c0_9] : memref<16x16x32xbf16, #tpu.memory_space<vmem>>, vector<1x16x32xbf16>
    %15 = vector.shape_cast %14 : vector<1x16x32xbf16> to vector<16x32xbf16>
    %c6 = arith.constant 6 : index
    %c0_10 = arith.constant 0 : index
    %c0_11 = arith.constant 0 : index
    %16 = vector.load %arg2[%c6, %c0_10, %c0_11] : memref<16x16x32xbf16, #tpu.memory_space<vmem>>, vector<1x16x32xbf16>
    %17 = vector.shape_cast %16 : vector<1x16x32xbf16> to vector<16x32xbf16>
    "tpu.trace_start"() <{level = 10 : i32, message = "nd,kd->nk"}> : () -> ()
    %cst_12 = arith.constant dense<0.000000e+00> : vector<16x16xf32>
    %18 = tpu.matmul %9, %11, %cst_12 {dimension_numbers = #tpu.dot_dimension_numbers<[1], [1], [0], [0], [0, 0, 1, 0], [], []>} : vector<16x32xbf16>, vector<16x32xbf16>, vector<16x16xf32> -> vector<16x16xf32>
    "tpu.trace_stop"() : () -> ()
    %c0_13 = arith.constant 0 : index
    %c7 = arith.constant 7 : index
    %c0_14 = arith.constant 0 : index
    %19 = vector.load %arg4[%c0_13, %c7, %c0_14] : memref<2x16x128xf32, #tpu.memory_space<vmem>>, vector<1x1x16xf32>
    %20 = vector.shape_cast %19 : vector<1x1x16xf32> to vector<1x16xf32>
    %21 = vector.broadcast %20 : vector<1x16xf32> to vector<16x16xf32>
    %22 = arith.addf %18, %21 : vector<16x16xf32>
    "tpu.trace_start"() <{level = 10 : i32, message = "nd,kd->nk"}> : () -> ()
    %cst_15 = arith.constant dense<0.000000e+00> : vector<16x16xf32>
    %23 = tpu.matmul %9, %13, %cst_15 {dimension_numbers = #tpu.dot_dimension_numbers<[1], [1], [0], [0], [0, 0, 1, 0], [], []>} : vector<16x32xbf16>, vector<16x32xbf16>, vector<16x16xf32> -> vector<16x16xf32>
    "tpu.trace_stop"() : () -> ()
    %c0_16 = arith.constant 0 : index
    %c9 = arith.constant 9 : index
    %c0_17 = arith.constant 0 : index
    %24 = vector.load %arg4[%c0_16, %c9, %c0_17] : memref<2x16x128xf32, #tpu.memory_space<vmem>>, vector<1x1x16xf32>
    %25 = vector.shape_cast %24 : vector<1x1x16xf32> to vector<1x16xf32>
    %26 = vector.broadcast %25 : vector<1x16xf32> to vector<16x16xf32>
    %27 = arith.addf %23, %26 : vector<16x16xf32>
    "tpu.trace_start"() <{level = 10 : i32, message = "nd,kd->nk"}> : () -> ()
    %cst_18 = arith.constant dense<0.000000e+00> : vector<16x16xf32>
    %28 = tpu.matmul %9, %15, %cst_18 {dimension_numbers = #tpu.dot_dimension_numbers<[1], [1], [0], [0], [0, 0, 1, 0], [], []>} : vector<16x32xbf16>, vector<16x32xbf16>, vector<16x16xf32> -> vector<16x16xf32>
    "tpu.trace_stop"() : () -> ()
    %c0_19 = arith.constant 0 : index
    %c11 = arith.constant 11 : index
    %c0_20 = arith.constant 0 : index
    %29 = vector.load %arg4[%c0_19, %c11, %c0_20] : memref<2x16x128xf32, #tpu.memory_space<vmem>>, vector<1x1x16xf32>
    %30 = vector.shape_cast %29 : vector<1x1x16xf32> to vector<1x16xf32>
    %31 = vector.broadcast %30 : vector<1x16xf32> to vector<16x16xf32>
    %32 = arith.addf %28, %31 : vector<16x16xf32>
    %33 = vector.shape_cast %22 : vector<16x16xf32> to vector<2x8x16xf32>
    %34 = vector.shape_cast %27 : vector<16x16xf32> to vector<2x8x16xf32>
    %35 = vector.shape_cast %32 : vector<16x16xf32> to vector<2x8x16xf32>
    %36 = arith.truncf %33 : vector<2x8x16xf32> to vector<2x8x16xbf16>
    %37 = arith.truncf %34 : vector<2x8x16xf32> to vector<2x8x16xbf16>
    "tpu.trace_start"() <{level = 10 : i32, message = "bqd,bkd->bqk"}> : () -> ()
    %cst_21 = arith.constant dense<0.000000e+00> : vector<2x8x8xf32>
    %38 = tpu.matmul %36, %37, %cst_21 {dimension_numbers = #tpu.dot_dimension_numbers<[2], [2], [1], [1], [0, 0, 0, 1, 1, 1], [0], [0]>} : vector<2x8x16xbf16>, vector<2x8x16xbf16>, vector<2x8x8xf32> -> vector<2x8x8xf32>
    "tpu.trace_stop"() : () -> ()
    %c0_22 = arith.constant 0 : index
    %c0_23 = arith.constant 0 : index
    %c0_24 = arith.constant 0 : index
    %39 = vector.load %arg5[%c0_22, %c0_23, %c0_24] : memref<4x8x8xf32, #tpu.memory_space<vmem>>, vector<1x8x8xf32>
    %40 = vector.shape_cast %39 : vector<1x8x8xf32> to vector<8x8xf32>
    %41 = vector.shape_cast %40 : vector<8x8xf32> to vector<1x8x8xf32>
    %42 = vector.broadcast %41 : vector<1x8x8xf32> to vector<2x8x8xf32>
    %43 = arith.addf %38, %42 : vector<2x8x8xf32>
    %cst_25 = arith.constant dense<0xFF800000> : vector<2x8xf32>
    %44 = vector.multi_reduction <maximumf>, %43, %cst_25 [2] : vector<2x8x8xf32> to vector<2x8xf32>
    %45 = vector.shape_cast %44 : vector<2x8xf32> to vector<2x8x1xf32>
    %46 = vector.broadcast %45 : vector<2x8x1xf32> to vector<2x8x8xf32>
    %47 = arith.subf %43, %46 : vector<2x8x8xf32>
    %48 = math.exp %47 : vector<2x8x8xf32>
    %cst_26 = arith.constant dense<0.000000e+00> : vector<2x8xf32>
    %49 = vector.multi_reduction <add>, %48, %cst_26 [2] : vector<2x8x8xf32> to vector<2x8xf32>
    %50 = vector.shape_cast %49 : vector<2x8xf32> to vector<2x8x1xf32>
    %51 = tpu.reciprocal %50 {approx = true} : vector<2x8x1xf32> -> vector<2x8x1xf32>
    %52 = vector.broadcast %51 : vector<2x8x1xf32> to vector<2x8x8xf32>
    %53 = arith.mulf %48, %52 : vector<2x8x8xf32>
    %54 = arith.truncf %53 : vector<2x8x8xf32> to vector<2x8x8xbf16>
    %55 = arith.truncf %35 : vector<2x8x16xf32> to vector<2x8x16xbf16>
    "tpu.trace_start"() <{level = 10 : i32, message = "bqk,bkd->bqd"}> : () -> ()
    %cst_27 = arith.constant dense<0.000000e+00> : vector<2x8x16xf32>
    %56 = tpu.matmul %54, %55, %cst_27 {dimension_numbers = #tpu.dot_dimension_numbers<[2], [1], [1], [2], [0, 0, 0, 1, 1, 2], [0], [0]>} : vector<2x8x8xbf16>, vector<2x8x16xbf16>, vector<2x8x16xf32> -> vector<2x8x16xf32>
    "tpu.trace_stop"() : () -> ()
    %57 = vector.shape_cast %56 : vector<2x8x16xf32> to vector<16x16xf32>
    %58 = arith.truncf %57 : vector<16x16xf32> to vector<16x16xbf16>
    %cst_28 = arith.constant dense<0.000000e+00> : vector<16x32xf32>
    %59 = tpu.matmul %58, %17, %cst_28 {dimension_numbers = #tpu.dot_dimension_numbers<[1], [0], [0], [1], [0, 0, 1, 1], [], []>} : vector<16x16xbf16>, vector<16x32xbf16>, vector<16x32xf32> -> vector<16x32xf32>
    %c1 = arith.constant 1 : index
    %c0_29 = arith.constant 0 : index
    %c0_30 = arith.constant 0 : index
    %60 = vector.load %arg2[%c1, %c0_29, %c0_30] : memref<16x16x32xbf16, #tpu.memory_space<vmem>>, vector<1x16x32xbf16>
    %61 = vector.shape_cast %60 : vector<1x16x32xbf16> to vector<16x32xbf16>
    %c3 = arith.constant 3 : index
    %c0_31 = arith.constant 0 : index
    %c0_32 = arith.constant 0 : index
    %62 = vector.load %arg2[%c3, %c0_31, %c0_32] : memref<16x16x32xbf16, #tpu.memory_space<vmem>>, vector<1x16x32xbf16>
    %63 = vector.shape_cast %62 : vector<1x16x32xbf16> to vector<16x32xbf16>
    %c5 = arith.constant 5 : index
    %c0_33 = arith.constant 0 : index
    %c0_34 = arith.constant 0 : index
    %64 = vector.load %arg2[%c5, %c0_33, %c0_34] : memref<16x16x32xbf16, #tpu.memory_space<vmem>>, vector<1x16x32xbf16>
    %65 = vector.shape_cast %64 : vector<1x16x32xbf16> to vector<16x32xbf16>
    %c7_35 = arith.constant 7 : index
    %c0_36 = arith.constant 0 : index
    %c0_37 = arith.constant 0 : index
    %66 = vector.load %arg2[%c7_35, %c0_36, %c0_37] : memref<16x16x32xbf16, #tpu.memory_space<vmem>>, vector<1x16x32xbf16>
    %67 = vector.shape_cast %66 : vector<1x16x32xbf16> to vector<16x32xbf16>
    "tpu.trace_start"() <{level = 10 : i32, message = "nd,kd->nk"}> : () -> ()
    %cst_38 = arith.constant dense<0.000000e+00> : vector<16x16xf32>
    %68 = tpu.matmul %9, %61, %cst_38 {dimension_numbers = #tpu.dot_dimension_numbers<[1], [1], [0], [0], [0, 0, 1, 0], [], []>} : vector<16x32xbf16>, vector<16x32xbf16>, vector<16x16xf32> -> vector<16x16xf32>
    "tpu.trace_stop"() : () -> ()
    %c0_39 = arith.constant 0 : index
    %c8 = arith.constant 8 : index
    %c0_40 = arith.constant 0 : index
    %69 = vector.load %arg4[%c0_39, %c8, %c0_40] : memref<2x16x128xf32, #tpu.memory_space<vmem>>, vector<1x1x16xf32>
    %70 = vector.shape_cast %69 : vector<1x1x16xf32> to vector<1x16xf32>
    %71 = vector.broadcast %70 : vector<1x16xf32> to vector<16x16xf32>
    %72 = arith.addf %68, %71 : vector<16x16xf32>
    "tpu.trace_start"() <{level = 10 : i32, message = "nd,kd->nk"}> : () -> ()
    %cst_41 = arith.constant dense<0.000000e+00> : vector<16x16xf32>
    %73 = tpu.matmul %9, %63, %cst_41 {dimension_numbers = #tpu.dot_dimension_numbers<[1], [1], [0], [0], [0, 0, 1, 0], [], []>} : vector<16x32xbf16>, vector<16x32xbf16>, vector<16x16xf32> -> vector<16x16xf32>
    "tpu.trace_stop"() : () -> ()
    %c0_42 = arith.constant 0 : index
    %c10 = arith.constant 10 : index
    %c0_43 = arith.constant 0 : index
    %74 = vector.load %arg4[%c0_42, %c10, %c0_43] : memref<2x16x128xf32, #tpu.memory_space<vmem>>, vector<1x1x16xf32>
    %75 = vector.shape_cast %74 : vector<1x1x16xf32> to vector<1x16xf32>
    %76 = vector.broadcast %75 : vector<1x16xf32> to vector<16x16xf32>
    %77 = arith.addf %73, %76 : vector<16x16xf32>
    "tpu.trace_start"() <{level = 10 : i32, message = "nd,kd->nk"}> : () -> ()
    %cst_44 = arith.constant dense<0.000000e+00> : vector<16x16xf32>
    %78 = tpu.matmul %9, %65, %cst_44 {dimension_numbers = #tpu.dot_dimension_numbers<[1], [1], [0], [0], [0, 0, 1, 0], [], []>} : vector<16x32xbf16>, vector<16x32xbf16>, vector<16x16xf32> -> vector<16x16xf32>
    "tpu.trace_stop"() : () -> ()
    %c0_45 = arith.constant 0 : index
    %c12 = arith.constant 12 : index
    %c0_46 = arith.constant 0 : index
    %79 = vector.load %arg4[%c0_45, %c12, %c0_46] : memref<2x16x128xf32, #tpu.memory_space<vmem>>, vector<1x1x16xf32>
    %80 = vector.shape_cast %79 : vector<1x1x16xf32> to vector<1x16xf32>
    %81 = vector.broadcast %80 : vector<1x16xf32> to vector<16x16xf32>
    %82 = arith.addf %78, %81 : vector<16x16xf32>
    %83 = vector.shape_cast %72 : vector<16x16xf32> to vector<2x8x16xf32>
    %84 = vector.shape_cast %77 : vector<16x16xf32> to vector<2x8x16xf32>
    %85 = vector.shape_cast %82 : vector<16x16xf32> to vector<2x8x16xf32>
    %86 = arith.truncf %83 : vector<2x8x16xf32> to vector<2x8x16xbf16>
    %87 = arith.truncf %84 : vector<2x8x16xf32> to vector<2x8x16xbf16>
    "tpu.trace_start"() <{level = 10 : i32, message = "bqd,bkd->bqk"}> : () -> ()
    %cst_47 = arith.constant dense<0.000000e+00> : vector<2x8x8xf32>
    %88 = tpu.matmul %86, %87, %cst_47 {dimension_numbers = #tpu.dot_dimension_numbers<[2], [2], [1], [1], [0, 0, 0, 1, 1, 1], [0], [0]>} : vector<2x8x16xbf16>, vector<2x8x16xbf16>, vector<2x8x8xf32> -> vector<2x8x8xf32>
    "tpu.trace_stop"() : () -> ()
    %c1_48 = arith.constant 1 : index
    %c0_49 = arith.constant 0 : index
    %c0_50 = arith.constant 0 : index
    %89 = vector.load %arg5[%c1_48, %c0_49, %c0_50] : memref<4x8x8xf32, #tpu.memory_space<vmem>>, vector<1x8x8xf32>
    %90 = vector.shape_cast %89 : vector<1x8x8xf32> to vector<8x8xf32>
    %91 = vector.shape_cast %90 : vector<8x8xf32> to vector<1x8x8xf32>
    %92 = vector.broadcast %91 : vector<1x8x8xf32> to vector<2x8x8xf32>
    %93 = arith.addf %88, %92 : vector<2x8x8xf32>
    %cst_51 = arith.constant dense<0xFF800000> : vector<2x8xf32>
    %94 = vector.multi_reduction <maximumf>, %93, %cst_51 [2] : vector<2x8x8xf32> to vector<2x8xf32>
    %95 = vector.shape_cast %94 : vector<2x8xf32> to vector<2x8x1xf32>
    %96 = vector.broadcast %95 : vector<2x8x1xf32> to vector<2x8x8xf32>
    %97 = arith.subf %93, %96 : vector<2x8x8xf32>
    %98 = math.exp %97 : vector<2x8x8xf32>
    %cst_52 = arith.constant dense<0.000000e+00> : vector<2x8xf32>
    %99 = vector.multi_reduction <add>, %98, %cst_52 [2] : vector<2x8x8xf32> to vector<2x8xf32>
    %100 = vector.shape_cast %99 : vector<2x8xf32> to vector<2x8x1xf32>
    %101 = tpu.reciprocal %100 {approx = true} : vector<2x8x1xf32> -> vector<2x8x1xf32>
    %102 = vector.broadcast %101 : vector<2x8x1xf32> to vector<2x8x8xf32>
    %103 = arith.mulf %98, %102 : vector<2x8x8xf32>
    %104 = arith.truncf %103 : vector<2x8x8xf32> to vector<2x8x8xbf16>
    %105 = arith.truncf %85 : vector<2x8x16xf32> to vector<2x8x16xbf16>
    "tpu.trace_start"() <{level = 10 : i32, message = "bqk,bkd->bqd"}> : () -> ()
    %cst_53 = arith.constant dense<0.000000e+00> : vector<2x8x16xf32>
    %106 = tpu.matmul %104, %105, %cst_53 {dimension_numbers = #tpu.dot_dimension_numbers<[2], [1], [1], [2], [0, 0, 0, 1, 1, 2], [0], [0]>} : vector<2x8x8xbf16>, vector<2x8x16xbf16>, vector<2x8x16xf32> -> vector<2x8x16xf32>
    "tpu.trace_stop"() : () -> ()
    %107 = vector.shape_cast %106 : vector<2x8x16xf32> to vector<16x16xf32>
    %108 = arith.truncf %107 : vector<16x16xf32> to vector<16x16xbf16>
    %cst_54 = arith.constant dense<0.000000e+00> : vector<16x32xf32>
    %109 = tpu.matmul %108, %67, %cst_54 {dimension_numbers = #tpu.dot_dimension_numbers<[1], [0], [0], [1], [0, 0, 1, 1], [], []>} : vector<16x16xbf16>, vector<16x32xbf16>, vector<16x32xf32> -> vector<16x32xf32>
    %110 = arith.addf %59, %109 : vector<16x32xf32>
    %c0_55 = arith.constant 0 : index
    %c4_56 = arith.constant 4 : index
    %c0_57 = arith.constant 0 : index
    %111 = vector.load %arg4[%c0_55, %c4_56, %c0_57] : memref<2x16x128xf32, #tpu.memory_space<vmem>>, vector<1x1x32xf32>
    %112 = vector.shape_cast %111 : vector<1x1x32xf32> to vector<1x32xf32>
    %113 = vector.broadcast %112 : vector<1x32xf32> to vector<16x32xf32>
    %114 = arith.addf %110, %113 : vector<16x32xf32>
    %115 = arith.addf %8, %114 : vector<16x32xf32>
    %c0_58 = arith.constant 0 : index
    %c0_59 = arith.constant 0 : index
    %c0_60 = arith.constant 0 : index
    %116 = vector.load %arg4[%c0_58, %c0_59, %c0_60] : memref<2x16x128xf32, #tpu.memory_space<vmem>>, vector<1x1x32xf32>
    %117 = vector.shape_cast %116 : vector<1x1x32xf32> to vector<1x32xf32>
    %c0_61 = arith.constant 0 : index
    %c1_62 = arith.constant 1 : index
    %c0_63 = arith.constant 0 : index
    %118 = vector.load %arg4[%c0_61, %c1_62, %c0_63] : memref<2x16x128xf32, #tpu.memory_space<vmem>>, vector<1x1x32xf32>
    %119 = vector.shape_cast %118 : vector<1x1x32xf32> to vector<1x32xf32>
    %cst_64 = arith.constant dense<0.000000e+00> : vector<16xf32>
    %120 = vector.multi_reduction <add>, %115, %cst_64 [1] : vector<16x32xf32> to vector<16xf32>
    %121 = vector.shape_cast %120 : vector<16xf32> to vector<16x1xf32>
    %cst_65 = arith.constant 3.200000e+01 : f32
    %122 = vector.broadcast %cst_65 : f32 to vector<16x1xf32>
    %123 = arith.divf %121, %122 : vector<16x1xf32>
    %124 = vector.broadcast %123 : vector<16x1xf32> to vector<16x32xf32>
    %125 = arith.subf %115, %124 : vector<16x32xf32>
    %126 = vector.broadcast %123 : vector<16x1xf32> to vector<16x32xf32>
    %127 = arith.subf %115, %126 : vector<16x32xf32>
    %128 = arith.mulf %125, %127 : vector<16x32xf32>
    %cst_66 = arith.constant dense<0.000000e+00> : vector<16xf32>
    %129 = vector.multi_reduction <add>, %128, %cst_66 [1] : vector<16x32xf32> to vector<16xf32>
    %130 = vector.shape_cast %129 : vector<16xf32> to vector<16x1xf32>
    %cst_67 = arith.constant 3.200000e+01 : f32
    %131 = vector.broadcast %cst_67 : f32 to vector<16x1xf32>
    %132 = arith.divf %130, %131 : vector<16x1xf32>
    %133 = vector.broadcast %123 : vector<16x1xf32> to vector<16x32xf32>
    %134 = arith.subf %115, %133 : vector<16x32xf32>
    %cst_68 = arith.constant 9.99999996E-13 : f32
    %135 = vector.broadcast %cst_68 : f32 to vector<16x1xf32>
    %136 = arith.addf %132, %135 : vector<16x1xf32>
    %137 = math.rsqrt %136 : vector<16x1xf32>
    %138 = vector.broadcast %137 : vector<16x1xf32> to vector<16x32xf32>
    %139 = arith.mulf %134, %138 : vector<16x32xf32>
    %140 = vector.broadcast %117 : vector<1x32xf32> to vector<16x32xf32>
    %141 = arith.mulf %139, %140 : vector<16x32xf32>
    %142 = vector.broadcast %119 : vector<1x32xf32> to vector<16x32xf32>
    %143 = arith.addf %141, %142 : vector<16x32xf32>
    %144 = arith.truncf %143 : vector<16x32xf32> to vector<16x32xbf16>
    %c0_69 = arith.constant 0 : index
    %c0_70 = arith.constant 0 : index
    %c0_71 = arith.constant 0 : index
    %145 = vector.load %arg3[%c0_69, %c0_70, %c0_71] : memref<4x64x32xbf16, #tpu.memory_space<vmem>>, vector<1x64x32xbf16>
    %146 = vector.shape_cast %145 : vector<1x64x32xbf16> to vector<64x32xbf16>
    "tpu.trace_start"() <{level = 10 : i32, message = "nd,fd->nf"}> : () -> ()
    %cst_72 = arith.constant dense<0.000000e+00> : vector<16x64xf32>
    %147 = tpu.matmul %144, %146, %cst_72 {dimension_numbers = #tpu.dot_dimension_numbers<[1], [1], [0], [0], [0, 0, 1, 0], [], []>} : vector<16x32xbf16>, vector<64x32xbf16>, vector<16x64xf32> -> vector<16x64xf32>
    "tpu.trace_stop"() : () -> ()
    %c0_73 = arith.constant 0 : index
    %c5_74 = arith.constant 5 : index
    %c0_75 = arith.constant 0 : index
    %148 = vector.load %arg4[%c0_73, %c5_74, %c0_75] : memref<2x16x128xf32, #tpu.memory_space<vmem>>, vector<1x1x64xf32>
    %149 = vector.shape_cast %148 : vector<1x1x64xf32> to vector<1x64xf32>
    %150 = vector.broadcast %149 : vector<1x64xf32> to vector<16x64xf32>
    %151 = arith.addf %147, %150 : vector<16x64xf32>
    %152 = arith.mulf %151, %151 : vector<16x64xf32>
    %153 = arith.mulf %151, %152 : vector<16x64xf32>
    %cst_76 = arith.constant 4.471500e-02 : f32
    %154 = vector.broadcast %cst_76 : f32 to vector<16x64xf32>
    %155 = arith.mulf %154, %153 : vector<16x64xf32>
    %156 = arith.addf %151, %155 : vector<16x64xf32>
    %cst_77 = arith.constant 0.797884583 : f32
    %157 = vector.broadcast %cst_77 : f32 to vector<16x64xf32>
    %158 = arith.mulf %157, %156 : vector<16x64xf32>
    %159 = math.tanh %158 : vector<16x64xf32>
    %cst_78 = arith.constant 1.000000e+00 : f32
    %160 = vector.broadcast %cst_78 : f32 to vector<16x64xf32>
    %161 = arith.addf %160, %159 : vector<16x64xf32>
    %cst_79 = arith.constant 5.000000e-01 : f32
    %162 = vector.broadcast %cst_79 : f32 to vector<16x64xf32>
    %163 = arith.mulf %162, %161 : vector<16x64xf32>
    %164 = arith.mulf %151, %163 : vector<16x64xf32>
    %165 = arith.truncf %164 : vector<16x64xf32> to vector<16x64xbf16>
    %c1_80 = arith.constant 1 : index
    %c0_81 = arith.constant 0 : index
    %c0_82 = arith.constant 0 : index
    %166 = vector.load %arg3[%c1_80, %c0_81, %c0_82] : memref<4x64x32xbf16, #tpu.memory_space<vmem>>, vector<1x64x32xbf16>
    %167 = vector.shape_cast %166 : vector<1x64x32xbf16> to vector<64x32xbf16>
    %cst_83 = arith.constant dense<0.000000e+00> : vector<16x32xf32>
    %168 = tpu.matmul %165, %167, %cst_83 {dimension_numbers = #tpu.dot_dimension_numbers<[1], [0], [0], [1], [0, 0, 1, 1], [], []>} : vector<16x64xbf16>, vector<64x32xbf16>, vector<16x32xf32> -> vector<16x32xf32>
    %c0_84 = arith.constant 0 : index
    %c6_85 = arith.constant 6 : index
    %c0_86 = arith.constant 0 : index
    %169 = vector.load %arg4[%c0_84, %c6_85, %c0_86] : memref<2x16x128xf32, #tpu.memory_space<vmem>>, vector<1x1x32xf32>
    %170 = vector.shape_cast %169 : vector<1x1x32xf32> to vector<1x32xf32>
    %171 = vector.broadcast %170 : vector<1x32xf32> to vector<16x32xf32>
    %172 = arith.addf %168, %171 : vector<16x32xf32>
    %173 = arith.addf %143, %172 : vector<16x32xf32>
    %c0_87 = arith.constant 0 : index
    %c2_88 = arith.constant 2 : index
    %c0_89 = arith.constant 0 : index
    %174 = vector.load %arg4[%c0_87, %c2_88, %c0_89] : memref<2x16x128xf32, #tpu.memory_space<vmem>>, vector<1x1x32xf32>
    %175 = vector.shape_cast %174 : vector<1x1x32xf32> to vector<1x32xf32>
    %c0_90 = arith.constant 0 : index
    %c3_91 = arith.constant 3 : index
    %c0_92 = arith.constant 0 : index
    %176 = vector.load %arg4[%c0_90, %c3_91, %c0_92] : memref<2x16x128xf32, #tpu.memory_space<vmem>>, vector<1x1x32xf32>
    %177 = vector.shape_cast %176 : vector<1x1x32xf32> to vector<1x32xf32>
    %cst_93 = arith.constant dense<0.000000e+00> : vector<16xf32>
    %178 = vector.multi_reduction <add>, %173, %cst_93 [1] : vector<16x32xf32> to vector<16xf32>
    %179 = vector.shape_cast %178 : vector<16xf32> to vector<16x1xf32>
    %cst_94 = arith.constant 3.200000e+01 : f32
    %180 = vector.broadcast %cst_94 : f32 to vector<16x1xf32>
    %181 = arith.divf %179, %180 : vector<16x1xf32>
    %182 = vector.broadcast %181 : vector<16x1xf32> to vector<16x32xf32>
    %183 = arith.subf %173, %182 : vector<16x32xf32>
    %184 = vector.broadcast %181 : vector<16x1xf32> to vector<16x32xf32>
    %185 = arith.subf %173, %184 : vector<16x32xf32>
    %186 = arith.mulf %183, %185 : vector<16x32xf32>
    %cst_95 = arith.constant dense<0.000000e+00> : vector<16xf32>
    %187 = vector.multi_reduction <add>, %186, %cst_95 [1] : vector<16x32xf32> to vector<16xf32>
    %188 = vector.shape_cast %187 : vector<16xf32> to vector<16x1xf32>
    %cst_96 = arith.constant 3.200000e+01 : f32
    %189 = vector.broadcast %cst_96 : f32 to vector<16x1xf32>
    %190 = arith.divf %188, %189 : vector<16x1xf32>
    %191 = vector.broadcast %181 : vector<16x1xf32> to vector<16x32xf32>
    %192 = arith.subf %173, %191 : vector<16x32xf32>
    %cst_97 = arith.constant 9.99999996E-13 : f32
    %193 = vector.broadcast %cst_97 : f32 to vector<16x1xf32>
    %194 = arith.addf %190, %193 : vector<16x1xf32>
    %195 = math.rsqrt %194 : vector<16x1xf32>
    %196 = vector.broadcast %195 : vector<16x1xf32> to vector<16x32xf32>
    %197 = arith.mulf %192, %196 : vector<16x32xf32>
    %198 = vector.broadcast %175 : vector<1x32xf32> to vector<16x32xf32>
    %199 = arith.mulf %197, %198 : vector<16x32xf32>
    %200 = vector.broadcast %177 : vector<1x32xf32> to vector<16x32xf32>
    %201 = arith.addf %199, %200 : vector<16x32xf32>
    %202 = arith.truncf %201 : vector<16x32xf32> to vector<16x32xbf16>
    %c8_98 = arith.constant 8 : index
    %c0_99 = arith.constant 0 : index
    %c0_100 = arith.constant 0 : index
    %203 = vector.load %arg2[%c8_98, %c0_99, %c0_100] : memref<16x16x32xbf16, #tpu.memory_space<vmem>>, vector<1x16x32xbf16>
    %204 = vector.shape_cast %203 : vector<1x16x32xbf16> to vector<16x32xbf16>
    %c10_101 = arith.constant 10 : index
    %c0_102 = arith.constant 0 : index
    %c0_103 = arith.constant 0 : index
    %205 = vector.load %arg2[%c10_101, %c0_102, %c0_103] : memref<16x16x32xbf16, #tpu.memory_space<vmem>>, vector<1x16x32xbf16>
    %206 = vector.shape_cast %205 : vector<1x16x32xbf16> to vector<16x32xbf16>
    %c12_104 = arith.constant 12 : index
    %c0_105 = arith.constant 0 : index
    %c0_106 = arith.constant 0 : index
    %207 = vector.load %arg2[%c12_104, %c0_105, %c0_106] : memref<16x16x32xbf16, #tpu.memory_space<vmem>>, vector<1x16x32xbf16>
    %208 = vector.shape_cast %207 : vector<1x16x32xbf16> to vector<16x32xbf16>
    %c14 = arith.constant 14 : index
    %c0_107 = arith.constant 0 : index
    %c0_108 = arith.constant 0 : index
    %209 = vector.load %arg2[%c14, %c0_107, %c0_108] : memref<16x16x32xbf16, #tpu.memory_space<vmem>>, vector<1x16x32xbf16>
    %210 = vector.shape_cast %209 : vector<1x16x32xbf16> to vector<16x32xbf16>
    "tpu.trace_start"() <{level = 10 : i32, message = "nd,kd->nk"}> : () -> ()
    %cst_109 = arith.constant dense<0.000000e+00> : vector<16x16xf32>
    %211 = tpu.matmul %202, %204, %cst_109 {dimension_numbers = #tpu.dot_dimension_numbers<[1], [1], [0], [0], [0, 0, 1, 0], [], []>} : vector<16x32xbf16>, vector<16x32xbf16>, vector<16x16xf32> -> vector<16x16xf32>
    "tpu.trace_stop"() : () -> ()
    %c1_110 = arith.constant 1 : index
    %c7_111 = arith.constant 7 : index
    %c0_112 = arith.constant 0 : index
    %212 = vector.load %arg4[%c1_110, %c7_111, %c0_112] : memref<2x16x128xf32, #tpu.memory_space<vmem>>, vector<1x1x16xf32>
    %213 = vector.shape_cast %212 : vector<1x1x16xf32> to vector<1x16xf32>
    %214 = vector.broadcast %213 : vector<1x16xf32> to vector<16x16xf32>
    %215 = arith.addf %211, %214 : vector<16x16xf32>
    "tpu.trace_start"() <{level = 10 : i32, message = "nd,kd->nk"}> : () -> ()
    %cst_113 = arith.constant dense<0.000000e+00> : vector<16x16xf32>
    %216 = tpu.matmul %202, %206, %cst_113 {dimension_numbers = #tpu.dot_dimension_numbers<[1], [1], [0], [0], [0, 0, 1, 0], [], []>} : vector<16x32xbf16>, vector<16x32xbf16>, vector<16x16xf32> -> vector<16x16xf32>
    "tpu.trace_stop"() : () -> ()
    %c1_114 = arith.constant 1 : index
    %c9_115 = arith.constant 9 : index
    %c0_116 = arith.constant 0 : index
    %217 = vector.load %arg4[%c1_114, %c9_115, %c0_116] : memref<2x16x128xf32, #tpu.memory_space<vmem>>, vector<1x1x16xf32>
    %218 = vector.shape_cast %217 : vector<1x1x16xf32> to vector<1x16xf32>
    %219 = vector.broadcast %218 : vector<1x16xf32> to vector<16x16xf32>
    %220 = arith.addf %216, %219 : vector<16x16xf32>
    "tpu.trace_start"() <{level = 10 : i32, message = "nd,kd->nk"}> : () -> ()
    %cst_117 = arith.constant dense<0.000000e+00> : vector<16x16xf32>
    %221 = tpu.matmul %202, %208, %cst_117 {dimension_numbers = #tpu.dot_dimension_numbers<[1], [1], [0], [0], [0, 0, 1, 0], [], []>} : vector<16x32xbf16>, vector<16x32xbf16>, vector<16x16xf32> -> vector<16x16xf32>
    "tpu.trace_stop"() : () -> ()
    %c1_118 = arith.constant 1 : index
    %c11_119 = arith.constant 11 : index
    %c0_120 = arith.constant 0 : index
    %222 = vector.load %arg4[%c1_118, %c11_119, %c0_120] : memref<2x16x128xf32, #tpu.memory_space<vmem>>, vector<1x1x16xf32>
    %223 = vector.shape_cast %222 : vector<1x1x16xf32> to vector<1x16xf32>
    %224 = vector.broadcast %223 : vector<1x16xf32> to vector<16x16xf32>
    %225 = arith.addf %221, %224 : vector<16x16xf32>
    %226 = vector.shape_cast %215 : vector<16x16xf32> to vector<2x8x16xf32>
    %227 = vector.shape_cast %220 : vector<16x16xf32> to vector<2x8x16xf32>
    %228 = vector.shape_cast %225 : vector<16x16xf32> to vector<2x8x16xf32>
    %229 = arith.truncf %226 : vector<2x8x16xf32> to vector<2x8x16xbf16>
    %230 = arith.truncf %227 : vector<2x8x16xf32> to vector<2x8x16xbf16>
    "tpu.trace_start"() <{level = 10 : i32, message = "bqd,bkd->bqk"}> : () -> ()
    %cst_121 = arith.constant dense<0.000000e+00> : vector<2x8x8xf32>
    %231 = tpu.matmul %229, %230, %cst_121 {dimension_numbers = #tpu.dot_dimension_numbers<[2], [2], [1], [1], [0, 0, 0, 1, 1, 1], [0], [0]>} : vector<2x8x16xbf16>, vector<2x8x16xbf16>, vector<2x8x8xf32> -> vector<2x8x8xf32>
    "tpu.trace_stop"() : () -> ()
    %c2_122 = arith.constant 2 : index
    %c0_123 = arith.constant 0 : index
    %c0_124 = arith.constant 0 : index
    %232 = vector.load %arg5[%c2_122, %c0_123, %c0_124] : memref<4x8x8xf32, #tpu.memory_space<vmem>>, vector<1x8x8xf32>
    %233 = vector.shape_cast %232 : vector<1x8x8xf32> to vector<8x8xf32>
    %234 = vector.shape_cast %233 : vector<8x8xf32> to vector<1x8x8xf32>
    %235 = vector.broadcast %234 : vector<1x8x8xf32> to vector<2x8x8xf32>
    %236 = arith.addf %231, %235 : vector<2x8x8xf32>
    %cst_125 = arith.constant dense<0xFF800000> : vector<2x8xf32>
    %237 = vector.multi_reduction <maximumf>, %236, %cst_125 [2] : vector<2x8x8xf32> to vector<2x8xf32>
    %238 = vector.shape_cast %237 : vector<2x8xf32> to vector<2x8x1xf32>
    %239 = vector.broadcast %238 : vector<2x8x1xf32> to vector<2x8x8xf32>
    %240 = arith.subf %236, %239 : vector<2x8x8xf32>
    %241 = math.exp %240 : vector<2x8x8xf32>
    %cst_126 = arith.constant dense<0.000000e+00> : vector<2x8xf32>
    %242 = vector.multi_reduction <add>, %241, %cst_126 [2] : vector<2x8x8xf32> to vector<2x8xf32>
    %243 = vector.shape_cast %242 : vector<2x8xf32> to vector<2x8x1xf32>
    %244 = tpu.reciprocal %243 {approx = true} : vector<2x8x1xf32> -> vector<2x8x1xf32>
    %245 = vector.broadcast %244 : vector<2x8x1xf32> to vector<2x8x8xf32>
    %246 = arith.mulf %241, %245 : vector<2x8x8xf32>
    %247 = arith.truncf %246 : vector<2x8x8xf32> to vector<2x8x8xbf16>
    %248 = arith.truncf %228 : vector<2x8x16xf32> to vector<2x8x16xbf16>
    "tpu.trace_start"() <{level = 10 : i32, message = "bqk,bkd->bqd"}> : () -> ()
    %cst_127 = arith.constant dense<0.000000e+00> : vector<2x8x16xf32>
    %249 = tpu.matmul %247, %248, %cst_127 {dimension_numbers = #tpu.dot_dimension_numbers<[2], [1], [1], [2], [0, 0, 0, 1, 1, 2], [0], [0]>} : vector<2x8x8xbf16>, vector<2x8x16xbf16>, vector<2x8x16xf32> -> vector<2x8x16xf32>
    "tpu.trace_stop"() : () -> ()
    %250 = vector.shape_cast %249 : vector<2x8x16xf32> to vector<16x16xf32>
    %251 = arith.truncf %250 : vector<16x16xf32> to vector<16x16xbf16>
    %cst_128 = arith.constant dense<0.000000e+00> : vector<16x32xf32>
    %252 = tpu.matmul %251, %210, %cst_128 {dimension_numbers = #tpu.dot_dimension_numbers<[1], [0], [0], [1], [0, 0, 1, 1], [], []>} : vector<16x16xbf16>, vector<16x32xbf16>, vector<16x32xf32> -> vector<16x32xf32>
    %c9_129 = arith.constant 9 : index
    %c0_130 = arith.constant 0 : index
    %c0_131 = arith.constant 0 : index
    %253 = vector.load %arg2[%c9_129, %c0_130, %c0_131] : memref<16x16x32xbf16, #tpu.memory_space<vmem>>, vector<1x16x32xbf16>
    %254 = vector.shape_cast %253 : vector<1x16x32xbf16> to vector<16x32xbf16>
    %c11_132 = arith.constant 11 : index
    %c0_133 = arith.constant 0 : index
    %c0_134 = arith.constant 0 : index
    %255 = vector.load %arg2[%c11_132, %c0_133, %c0_134] : memref<16x16x32xbf16, #tpu.memory_space<vmem>>, vector<1x16x32xbf16>
    %256 = vector.shape_cast %255 : vector<1x16x32xbf16> to vector<16x32xbf16>
    %c13 = arith.constant 13 : index
    %c0_135 = arith.constant 0 : index
    %c0_136 = arith.constant 0 : index
    %257 = vector.load %arg2[%c13, %c0_135, %c0_136] : memref<16x16x32xbf16, #tpu.memory_space<vmem>>, vector<1x16x32xbf16>
    %258 = vector.shape_cast %257 : vector<1x16x32xbf16> to vector<16x32xbf16>
    %c15 = arith.constant 15 : index
    %c0_137 = arith.constant 0 : index
    %c0_138 = arith.constant 0 : index
    %259 = vector.load %arg2[%c15, %c0_137, %c0_138] : memref<16x16x32xbf16, #tpu.memory_space<vmem>>, vector<1x16x32xbf16>
    %260 = vector.shape_cast %259 : vector<1x16x32xbf16> to vector<16x32xbf16>
    "tpu.trace_start"() <{level = 10 : i32, message = "nd,kd->nk"}> : () -> ()
    %cst_139 = arith.constant dense<0.000000e+00> : vector<16x16xf32>
    %261 = tpu.matmul %202, %254, %cst_139 {dimension_numbers = #tpu.dot_dimension_numbers<[1], [1], [0], [0], [0, 0, 1, 0], [], []>} : vector<16x32xbf16>, vector<16x32xbf16>, vector<16x16xf32> -> vector<16x16xf32>
    "tpu.trace_stop"() : () -> ()
    %c1_140 = arith.constant 1 : index
    %c8_141 = arith.constant 8 : index
    %c0_142 = arith.constant 0 : index
    %262 = vector.load %arg4[%c1_140, %c8_141, %c0_142] : memref<2x16x128xf32, #tpu.memory_space<vmem>>, vector<1x1x16xf32>
    %263 = vector.shape_cast %262 : vector<1x1x16xf32> to vector<1x16xf32>
    %264 = vector.broadcast %263 : vector<1x16xf32> to vector<16x16xf32>
    %265 = arith.addf %261, %264 : vector<16x16xf32>
    "tpu.trace_start"() <{level = 10 : i32, message = "nd,kd->nk"}> : () -> ()
    %cst_143 = arith.constant dense<0.000000e+00> : vector<16x16xf32>
    %266 = tpu.matmul %202, %256, %cst_143 {dimension_numbers = #tpu.dot_dimension_numbers<[1], [1], [0], [0], [0, 0, 1, 0], [], []>} : vector<16x32xbf16>, vector<16x32xbf16>, vector<16x16xf32> -> vector<16x16xf32>
    "tpu.trace_stop"() : () -> ()
    %c1_144 = arith.constant 1 : index
    %c10_145 = arith.constant 10 : index
    %c0_146 = arith.constant 0 : index
    %267 = vector.load %arg4[%c1_144, %c10_145, %c0_146] : memref<2x16x128xf32, #tpu.memory_space<vmem>>, vector<1x1x16xf32>
    %268 = vector.shape_cast %267 : vector<1x1x16xf32> to vector<1x16xf32>
    %269 = vector.broadcast %268 : vector<1x16xf32> to vector<16x16xf32>
    %270 = arith.addf %266, %269 : vector<16x16xf32>
    "tpu.trace_start"() <{level = 10 : i32, message = "nd,kd->nk"}> : () -> ()
    %cst_147 = arith.constant dense<0.000000e+00> : vector<16x16xf32>
    %271 = tpu.matmul %202, %258, %cst_147 {dimension_numbers = #tpu.dot_dimension_numbers<[1], [1], [0], [0], [0, 0, 1, 0], [], []>} : vector<16x32xbf16>, vector<16x32xbf16>, vector<16x16xf32> -> vector<16x16xf32>
    "tpu.trace_stop"() : () -> ()
    %c1_148 = arith.constant 1 : index
    %c12_149 = arith.constant 12 : index
    %c0_150 = arith.constant 0 : index
    %272 = vector.load %arg4[%c1_148, %c12_149, %c0_150] : memref<2x16x128xf32, #tpu.memory_space<vmem>>, vector<1x1x16xf32>
    %273 = vector.shape_cast %272 : vector<1x1x16xf32> to vector<1x16xf32>
    %274 = vector.broadcast %273 : vector<1x16xf32> to vector<16x16xf32>
    %275 = arith.addf %271, %274 : vector<16x16xf32>
    %276 = vector.shape_cast %265 : vector<16x16xf32> to vector<2x8x16xf32>
    %277 = vector.shape_cast %270 : vector<16x16xf32> to vector<2x8x16xf32>
    %278 = vector.shape_cast %275 : vector<16x16xf32> to vector<2x8x16xf32>
    %279 = arith.truncf %276 : vector<2x8x16xf32> to vector<2x8x16xbf16>
    %280 = arith.truncf %277 : vector<2x8x16xf32> to vector<2x8x16xbf16>
    "tpu.trace_start"() <{level = 10 : i32, message = "bqd,bkd->bqk"}> : () -> ()
    %cst_151 = arith.constant dense<0.000000e+00> : vector<2x8x8xf32>
    %281 = tpu.matmul %279, %280, %cst_151 {dimension_numbers = #tpu.dot_dimension_numbers<[2], [2], [1], [1], [0, 0, 0, 1, 1, 1], [0], [0]>} : vector<2x8x16xbf16>, vector<2x8x16xbf16>, vector<2x8x8xf32> -> vector<2x8x8xf32>
    "tpu.trace_stop"() : () -> ()
    %c3_152 = arith.constant 3 : index
    %c0_153 = arith.constant 0 : index
    %c0_154 = arith.constant 0 : index
    %282 = vector.load %arg5[%c3_152, %c0_153, %c0_154] : memref<4x8x8xf32, #tpu.memory_space<vmem>>, vector<1x8x8xf32>
    %283 = vector.shape_cast %282 : vector<1x8x8xf32> to vector<8x8xf32>
    %284 = vector.shape_cast %283 : vector<8x8xf32> to vector<1x8x8xf32>
    %285 = vector.broadcast %284 : vector<1x8x8xf32> to vector<2x8x8xf32>
    %286 = arith.addf %281, %285 : vector<2x8x8xf32>
    %cst_155 = arith.constant dense<0xFF800000> : vector<2x8xf32>
    %287 = vector.multi_reduction <maximumf>, %286, %cst_155 [2] : vector<2x8x8xf32> to vector<2x8xf32>
    %288 = vector.shape_cast %287 : vector<2x8xf32> to vector<2x8x1xf32>
    %289 = vector.broadcast %288 : vector<2x8x1xf32> to vector<2x8x8xf32>
    %290 = arith.subf %286, %289 : vector<2x8x8xf32>
    %291 = math.exp %290 : vector<2x8x8xf32>
    %cst_156 = arith.constant dense<0.000000e+00> : vector<2x8xf32>
    %292 = vector.multi_reduction <add>, %291, %cst_156 [2] : vector<2x8x8xf32> to vector<2x8xf32>
    %293 = vector.shape_cast %292 : vector<2x8xf32> to vector<2x8x1xf32>
    %294 = tpu.reciprocal %293 {approx = true} : vector<2x8x1xf32> -> vector<2x8x1xf32>
    %295 = vector.broadcast %294 : vector<2x8x1xf32> to vector<2x8x8xf32>
    %296 = arith.mulf %291, %295 : vector<2x8x8xf32>
    %297 = arith.truncf %296 : vector<2x8x8xf32> to vector<2x8x8xbf16>
    %298 = arith.truncf %278 : vector<2x8x16xf32> to vector<2x8x16xbf16>
    "tpu.trace_start"() <{level = 10 : i32, message = "bqk,bkd->bqd"}> : () -> ()
    %cst_157 = arith.constant dense<0.000000e+00> : vector<2x8x16xf32>
    %299 = tpu.matmul %297, %298, %cst_157 {dimension_numbers = #tpu.dot_dimension_numbers<[2], [1], [1], [2], [0, 0, 0, 1, 1, 2], [0], [0]>} : vector<2x8x8xbf16>, vector<2x8x16xbf16>, vector<2x8x16xf32> -> vector<2x8x16xf32>
    "tpu.trace_stop"() : () -> ()
    %300 = vector.shape_cast %299 : vector<2x8x16xf32> to vector<16x16xf32>
    %301 = arith.truncf %300 : vector<16x16xf32> to vector<16x16xbf16>
    %cst_158 = arith.constant dense<0.000000e+00> : vector<16x32xf32>
    %302 = tpu.matmul %301, %260, %cst_158 {dimension_numbers = #tpu.dot_dimension_numbers<[1], [0], [0], [1], [0, 0, 1, 1], [], []>} : vector<16x16xbf16>, vector<16x32xbf16>, vector<16x32xf32> -> vector<16x32xf32>
    %303 = arith.addf %252, %302 : vector<16x32xf32>
    %c1_159 = arith.constant 1 : index
    %c4_160 = arith.constant 4 : index
    %c0_161 = arith.constant 0 : index
    %304 = vector.load %arg4[%c1_159, %c4_160, %c0_161] : memref<2x16x128xf32, #tpu.memory_space<vmem>>, vector<1x1x32xf32>
    %305 = vector.shape_cast %304 : vector<1x1x32xf32> to vector<1x32xf32>
    %306 = vector.broadcast %305 : vector<1x32xf32> to vector<16x32xf32>
    %307 = arith.addf %303, %306 : vector<16x32xf32>
    %308 = arith.addf %201, %307 : vector<16x32xf32>
    %c1_162 = arith.constant 1 : index
    %c0_163 = arith.constant 0 : index
    %c0_164 = arith.constant 0 : index
    %309 = vector.load %arg4[%c1_162, %c0_163, %c0_164] : memref<2x16x128xf32, #tpu.memory_space<vmem>>, vector<1x1x32xf32>
    %310 = vector.shape_cast %309 : vector<1x1x32xf32> to vector<1x32xf32>
    %c1_165 = arith.constant 1 : index
    %c1_166 = arith.constant 1 : index
    %c0_167 = arith.constant 0 : index
    %311 = vector.load %arg4[%c1_165, %c1_166, %c0_167] : memref<2x16x128xf32, #tpu.memory_space<vmem>>, vector<1x1x32xf32>
    %312 = vector.shape_cast %311 : vector<1x1x32xf32> to vector<1x32xf32>
    %cst_168 = arith.constant dense<0.000000e+00> : vector<16xf32>
    %313 = vector.multi_reduction <add>, %308, %cst_168 [1] : vector<16x32xf32> to vector<16xf32>
    %314 = vector.shape_cast %313 : vector<16xf32> to vector<16x1xf32>
    %cst_169 = arith.constant 3.200000e+01 : f32
    %315 = vector.broadcast %cst_169 : f32 to vector<16x1xf32>
    %316 = arith.divf %314, %315 : vector<16x1xf32>
    %317 = vector.broadcast %316 : vector<16x1xf32> to vector<16x32xf32>
    %318 = arith.subf %308, %317 : vector<16x32xf32>
    %319 = vector.broadcast %316 : vector<16x1xf32> to vector<16x32xf32>
    %320 = arith.subf %308, %319 : vector<16x32xf32>
    %321 = arith.mulf %318, %320 : vector<16x32xf32>
    %cst_170 = arith.constant dense<0.000000e+00> : vector<16xf32>
    %322 = vector.multi_reduction <add>, %321, %cst_170 [1] : vector<16x32xf32> to vector<16xf32>
    %323 = vector.shape_cast %322 : vector<16xf32> to vector<16x1xf32>
    %cst_171 = arith.constant 3.200000e+01 : f32
    %324 = vector.broadcast %cst_171 : f32 to vector<16x1xf32>
    %325 = arith.divf %323, %324 : vector<16x1xf32>
    %326 = vector.broadcast %316 : vector<16x1xf32> to vector<16x32xf32>
    %327 = arith.subf %308, %326 : vector<16x32xf32>
    %cst_172 = arith.constant 9.99999996E-13 : f32
    %328 = vector.broadcast %cst_172 : f32 to vector<16x1xf32>
    %329 = arith.addf %325, %328 : vector<16x1xf32>
    %330 = math.rsqrt %329 : vector<16x1xf32>
    %331 = vector.broadcast %330 : vector<16x1xf32> to vector<16x32xf32>
    %332 = arith.mulf %327, %331 : vector<16x32xf32>
    %333 = vector.broadcast %310 : vector<1x32xf32> to vector<16x32xf32>
    %334 = arith.mulf %332, %333 : vector<16x32xf32>
    %335 = vector.broadcast %312 : vector<1x32xf32> to vector<16x32xf32>
    %336 = arith.addf %334, %335 : vector<16x32xf32>
    %337 = arith.truncf %336 : vector<16x32xf32> to vector<16x32xbf16>
    %c2_173 = arith.constant 2 : index
    %c0_174 = arith.constant 0 : index
    %c0_175 = arith.constant 0 : index
    %338 = vector.load %arg3[%c2_173, %c0_174, %c0_175] : memref<4x64x32xbf16, #tpu.memory_space<vmem>>, vector<1x64x32xbf16>
    %339 = vector.shape_cast %338 : vector<1x64x32xbf16> to vector<64x32xbf16>
    "tpu.trace_start"() <{level = 10 : i32, message = "nd,fd->nf"}> : () -> ()
    %cst_176 = arith.constant dense<0.000000e+00> : vector<16x64xf32>
    %340 = tpu.matmul %337, %339, %cst_176 {dimension_numbers = #tpu.dot_dimension_numbers<[1], [1], [0], [0], [0, 0, 1, 0], [], []>} : vector<16x32xbf16>, vector<64x32xbf16>, vector<16x64xf32> -> vector<16x64xf32>
    "tpu.trace_stop"() : () -> ()
    %c1_177 = arith.constant 1 : index
    %c5_178 = arith.constant 5 : index
    %c0_179 = arith.constant 0 : index
    %341 = vector.load %arg4[%c1_177, %c5_178, %c0_179] : memref<2x16x128xf32, #tpu.memory_space<vmem>>, vector<1x1x64xf32>
    %342 = vector.shape_cast %341 : vector<1x1x64xf32> to vector<1x64xf32>
    %343 = vector.broadcast %342 : vector<1x64xf32> to vector<16x64xf32>
    %344 = arith.addf %340, %343 : vector<16x64xf32>
    %345 = arith.mulf %344, %344 : vector<16x64xf32>
    %346 = arith.mulf %344, %345 : vector<16x64xf32>
    %cst_180 = arith.constant 4.471500e-02 : f32
    %347 = vector.broadcast %cst_180 : f32 to vector<16x64xf32>
    %348 = arith.mulf %347, %346 : vector<16x64xf32>
    %349 = arith.addf %344, %348 : vector<16x64xf32>
    %cst_181 = arith.constant 0.797884583 : f32
    %350 = vector.broadcast %cst_181 : f32 to vector<16x64xf32>
    %351 = arith.mulf %350, %349 : vector<16x64xf32>
    %352 = math.tanh %351 : vector<16x64xf32>
    %cst_182 = arith.constant 1.000000e+00 : f32
    %353 = vector.broadcast %cst_182 : f32 to vector<16x64xf32>
    %354 = arith.addf %353, %352 : vector<16x64xf32>
    %cst_183 = arith.constant 5.000000e-01 : f32
    %355 = vector.broadcast %cst_183 : f32 to vector<16x64xf32>
    %356 = arith.mulf %355, %354 : vector<16x64xf32>
    %357 = arith.mulf %344, %356 : vector<16x64xf32>
    %358 = arith.truncf %357 : vector<16x64xf32> to vector<16x64xbf16>
    %c3_184 = arith.constant 3 : index
    %c0_185 = arith.constant 0 : index
    %c0_186 = arith.constant 0 : index
    %359 = vector.load %arg3[%c3_184, %c0_185, %c0_186] : memref<4x64x32xbf16, #tpu.memory_space<vmem>>, vector<1x64x32xbf16>
    %360 = vector.shape_cast %359 : vector<1x64x32xbf16> to vector<64x32xbf16>
    %cst_187 = arith.constant dense<0.000000e+00> : vector<16x32xf32>
    %361 = tpu.matmul %358, %360, %cst_187 {dimension_numbers = #tpu.dot_dimension_numbers<[1], [0], [0], [1], [0, 0, 1, 1], [], []>} : vector<16x64xbf16>, vector<64x32xbf16>, vector<16x32xf32> -> vector<16x32xf32>
    %c1_188 = arith.constant 1 : index
    %c6_189 = arith.constant 6 : index
    %c0_190 = arith.constant 0 : index
    %362 = vector.load %arg4[%c1_188, %c6_189, %c0_190] : memref<2x16x128xf32, #tpu.memory_space<vmem>>, vector<1x1x32xf32>
    %363 = vector.shape_cast %362 : vector<1x1x32xf32> to vector<1x32xf32>
    %364 = vector.broadcast %363 : vector<1x32xf32> to vector<16x32xf32>
    %365 = arith.addf %361, %364 : vector<16x32xf32>
    %366 = arith.addf %336, %365 : vector<16x32xf32>
    %c1_191 = arith.constant 1 : index
    %c2_192 = arith.constant 2 : index
    %c0_193 = arith.constant 0 : index
    %367 = vector.load %arg4[%c1_191, %c2_192, %c0_193] : memref<2x16x128xf32, #tpu.memory_space<vmem>>, vector<1x1x32xf32>
    %368 = vector.shape_cast %367 : vector<1x1x32xf32> to vector<1x32xf32>
    %c1_194 = arith.constant 1 : index
    %c3_195 = arith.constant 3 : index
    %c0_196 = arith.constant 0 : index
    %369 = vector.load %arg4[%c1_194, %c3_195, %c0_196] : memref<2x16x128xf32, #tpu.memory_space<vmem>>, vector<1x1x32xf32>
    %370 = vector.shape_cast %369 : vector<1x1x32xf32> to vector<1x32xf32>
    %cst_197 = arith.constant dense<0.000000e+00> : vector<16xf32>
    %371 = vector.multi_reduction <add>, %366, %cst_197 [1] : vector<16x32xf32> to vector<16xf32>
    %372 = vector.shape_cast %371 : vector<16xf32> to vector<16x1xf32>
    %cst_198 = arith.constant 3.200000e+01 : f32
    %373 = vector.broadcast %cst_198 : f32 to vector<16x1xf32>
    %374 = arith.divf %372, %373 : vector<16x1xf32>
    %375 = vector.broadcast %374 : vector<16x1xf32> to vector<16x32xf32>
    %376 = arith.subf %366, %375 : vector<16x32xf32>
    %377 = vector.broadcast %374 : vector<16x1xf32> to vector<16x32xf32>
    %378 = arith.subf %366, %377 : vector<16x32xf32>
    %379 = arith.mulf %376, %378 : vector<16x32xf32>
    %cst_199 = arith.constant dense<0.000000e+00> : vector<16xf32>
    %380 = vector.multi_reduction <add>, %379, %cst_199 [1] : vector<16x32xf32> to vector<16xf32>
    %381 = vector.shape_cast %380 : vector<16xf32> to vector<16x1xf32>
    %cst_200 = arith.constant 3.200000e+01 : f32
    %382 = vector.broadcast %cst_200 : f32 to vector<16x1xf32>
    %383 = arith.divf %381, %382 : vector<16x1xf32>
    %384 = vector.broadcast %374 : vector<16x1xf32> to vector<16x32xf32>
    %385 = arith.subf %366, %384 : vector<16x32xf32>
    %cst_201 = arith.constant 9.99999996E-13 : f32
    %386 = vector.broadcast %cst_201 : f32 to vector<16x1xf32>
    %387 = arith.addf %383, %386 : vector<16x1xf32>
    %388 = math.rsqrt %387 : vector<16x1xf32>
    %389 = vector.broadcast %388 : vector<16x1xf32> to vector<16x32xf32>
    %390 = arith.mulf %385, %389 : vector<16x32xf32>
    %391 = vector.broadcast %368 : vector<1x32xf32> to vector<16x32xf32>
    %392 = arith.mulf %390, %391 : vector<16x32xf32>
    %393 = vector.broadcast %370 : vector<1x32xf32> to vector<16x32xf32>
    %394 = arith.addf %392, %393 : vector<16x32xf32>
    %395 = arith.truncf %394 : vector<16x32xf32> to vector<16x32xbf16>
    %396 = vector.shape_cast %395 : vector<16x32xbf16> to vector<16x1x32xbf16>
    %c0_202 = arith.constant 0 : index
    %c0_203 = arith.constant 0 : index
    %c0_204 = arith.constant 0 : index
    %397 = vector.load %arg6[%c0_202, %c0_203, %c0_204] : memref<16x2x32xbf16, #tpu.memory_space<vmem>>, vector<16x2x32xbf16>
    "tpu.trace_start"() <{level = 10 : i32, message = "nqd,ncd->nqc"}> : () -> ()
    %cst_205 = arith.constant dense<0.000000e+00> : vector<16x1x2xf32>
    %398 = tpu.matmul %396, %397, %cst_205 {dimension_numbers = #tpu.dot_dimension_numbers<[2], [2], [1], [1], [0, 0, 0, 1, 1, 1], [0], [0]>} : vector<16x1x32xbf16>, vector<16x2x32xbf16>, vector<16x1x2xf32> -> vector<16x1x2xf32>
    "tpu.trace_stop"() : () -> ()
    %399 = vector.shape_cast %398 : vector<16x1x2xf32> to vector<2x8x2xf32>
    %cst_206 = arith.constant dense<0.000000e+00> : vector<2x2xf32>
    %400 = vector.multi_reduction <add>, %399, %cst_206 [1] : vector<2x8x2xf32> to vector<2x2xf32>
    %c0_207 = arith.constant 0 : index
    %c13_208 = arith.constant 13 : index
    %c0_209 = arith.constant 0 : index
    %401 = vector.load %arg4[%c0_207, %c13_208, %c0_209] : memref<2x16x128xf32, #tpu.memory_space<vmem>>, vector<1x1x2xf32>
    %402 = vector.shape_cast %401 : vector<1x1x2xf32> to vector<1x2xf32>
    %403 = vector.broadcast %402 : vector<1x2xf32> to vector<2x2xf32>
    %404 = arith.addf %400, %403 : vector<2x2xf32>
    %c0_210 = arith.constant 0 : index
    %c0_211 = arith.constant 0 : index
    %405 = vector.load %arg7[%c0_210, %c0_211] : memref<2x2xf32, #tpu.memory_space<vmem>>, vector<2x2xf32>
    tpu.vector_store %arg7[%c0_210, %c0_211], %404 {strides = array<i32>} : memref<2x2xf32, #tpu.memory_space<vmem>>, vector<2x2xf32>,
    return
  }
}

</mosaic_0001>

<bundles_post_ra>
// kernel: model_forward.1
= control target key start
LH: loop header
LB: loop body
LE: loop exit
PB: predicated region body
PF: predicated region fallthrough
CT: control target
= control target key end

     0   :  { %v4246_v1 = vmov 0   ;;  %v4247_v2 = vmov 0.0   ;;  %vm4248_vm0 = vmmov 0   ;;  %vm144_vm1 = vcmask 261120   ;;  %s4984_s0 = inlined_call_operand.vmem [shape: s32[16,1], index: 0, kind: input, shape index: {}]   ;;  %s4985_s1 = inlined_call_operand.vmem [shape: bf16[64,32], index: 1, kind: input, shape index: {}]   ;;  %s4986_s2 = inlined_call_operand.vmem [shape: bf16[16,16,32], index: 2, kind: input, shape index: {}]   ;;  %s4987_s3 = inlined_call_operand.vmem [shape: bf16[4,64,32], index: 3, kind: input, shape index: {}]   ;;  %s4988_s4 = inlined_call_operand.vmem [shape: f32[2,16,128], index: 4, kind: input, shape index: {}]   ;;  %s4989_s5 = inlined_call_operand.vmem [shape: f32[4,8,8], index: 5, kind: input, shape index: {}]   ;;  %s4990_s6 = inlined_call_operand.vmem [shape: bf16[16,2,32], index: 6, kind: input, shape index: {}]   ;;  %s4991_s7 = inlined_call_operand.hbm [shape: f32[2,2], index: 7, kind: output, shape index: {}]  }
   0x1   :  { %v28_v0 = vld [vmem:[%s4984_s0] sm:$0xff]  ;;  %4129 = vset.pattern.permute.xlu0 %v4246_v1  ;;  %3776 = vmatprep.subr.bf16.mxu0 %v4247_v2  ;;  %v29_v4 = vld [vmem:[%s4984_s0 + $0x8] sm:$0xff]  ;;  %v4132_v6 = vld [vmem:[%s4985_s1 + $0x10] sm:$0xff]  }
   0x2   :  { %v4130_v3 = vld [vmem:[%s4985_s1] sm:$0xff]   ;;  %33 = vperm.xlu0 %4129, %v28_v0   ;;  %3788 = vmatprep.subr.bf16.mxu1 %v4247_v2  ;;  %v4131_v5 = vld [vmem:[%s4985_s1 + $0x8] sm:$0xff]   ;;  %v4133_v7 = vld [vmem:[%s4985_s1 + $0x18] sm:$0xff]  }
   0x3   :  { %3777 = vmatpush3.bf16.msra.mxu0 %v4130_v3  ;;  %3784 = vmatprep.mubr.msk.bf16.mxu0 %vm4248_vm0, %v4247_v2  ;;  %v4134_v8 = vld [vmem:[%s4986_s2] sm:$0xff]  }
   0x4   :  { %3778 = vmatprep.subr.bf16.mxu0 %v4247_v2  ;;  %3790 = vmatprep.mubr.msk.bf16.mxu1 %vm4248_vm0, %v4247_v2  ;;  %v149_v9 = vsel %vm144_vm1, %v4134_v8, 0 }
   0x5   :  { %3789 = vmatpush3.bf16.xpose.msra.mxu1 %v149_v9 }
   0x6   :  { %36 = vperm.xlu0 %4129, %v29_v4   ;;  %3794 = vmatprep.subr.bf16.mxu1 %v4247_v2 }
   0x7   :  { %3779 = vmatpush3.bf16.msra.mxu0 %v4131_v5 }
   0x8   :  { %3780 = vmatprep.subr.bf16.mxu0 %v4247_v2 }
   0xb   :  { %3781 = vmatpush3.bf16.msra.mxu0 %v4132_v6 }
   0xc   :  { %3782 = vmatprep.subr.bf16.mxu0 %v4247_v2 }
   0xf   :  { %3783 = vmatpush3.bf16.msra.mxu0 %v4133_v7 }
  0x10   :  { %3800 = vmatprep.subr.bf16.mxu0 %v4247_v2 }
  0x11   :  { %12 = vsyncpa [#allocation3], 0  ;;  %v30_v10 = vlaneseq  ;;  %v4135_v13 = vld [vmem:[%s4986_s2 + $0x20] sm:$0xff]   ;;  %vm77_vm4 = vcmask 523264   ;;  %v4136_v19 = vld [vmem:[%s4986_s2 + $0x10] sm:$0xff]   ;;  %vm305_vm5 = vcmask 130048  }
  0x12   :  { %v257_v18 = vsel %vm144_vm1, %v4135_v13, 0  ;;  %v203_v25 = vsel %vm144_vm1, %v4136_v19, 0  ;;  %v3474_v34 = vld [vmem:[%s4988_s4 + $0x9] ss:$0 sm:$0xff]  ;;  %v3477_v38 = vld [vmem:[%s4988_s4 + $0xb] ss:$0 sm:$0xff] }
  0x13   :  { %v31_v11 = vand.u32 127, %v30_v10  ;;  %v3471_v43 = vld [vmem:[%s4988_s4 + $0x7] ss:$0 sm:$0xff]  ;;  %vm428_vm6 = vcmask 1043456   ;;  %vm398_vm7 = vcmask 64512   ;;  %vm3379_vm8 = vcmask 1041409  }
  0x14   :  { %v304_v59 = vld [vmem:[%s4989_s5] sm:$0xff]  ;;  %vm3382_vm9 = vcmask 1042434   ;;  %vm3385_vm10 = vcmask 1043459   ;;  %vm3388_vm11 = vcmask 1044484   ;;  %vm3391_vm12 = vcmask 1045509   ;;  %s4250_s11 = smov [#allocation2]  }
  0x15   :  { %vm3394_vm13 = vcmask 1046534   ;;  %vm3397_vm14 = vcmask 1047559   ;;  %vm3415_vm15 = vcmask 15360   ;;  %s3450_s12 = sshll.u32 %s4250_s11, 4  ;;  %s3451_s12 = int_to_ptr.vmem [resolvable:$true] %s3450_s12 }
  0x16   :  { %s4222_s13 = scalar_lea.vmem %s3451_s12, 32  ;;  %p4227_p1 = scmp.lt.s32.totalorder %s3451_s12, %s3451_s12 }
  0x17   :  { %p4223_p0 = scmp.ne.s32.totalorder %s3451_s12, %s4222_s13  ;;  %p4228_p2 = scmp.lt.s32.totalorder %s4222_s13, %s4222_s13 }
  0x19   :  { %p4229_p3 = por %p4228_p2, %p4227_p1 }
  0x1b   :  { %p4230_p4 = pnand %p4229_p3, %p4223_p0 }
  0x81   :  { %v34_v12 = vpop.permute.xlu0 %33 }
  0x82   :  { %vm38_vm2 = vcmp.eq.s32.totalorder %v31_v11, %v34_v12 }
  0x83   :  { %v3458_v15 = vsel %vm38_vm2, 1.0, %v4247_v2 }
  0x85   :  { %v37_v14 = vpop.permute.xlu0 %36 }
  0x86   :  { %vm39_vm3 = vcmp.eq.s32.totalorder %v31_v11, %v37_v14 }
  0x87   :  { %v3459_v16 = vsel %vm39_vm3, 1.0, %v4247_v2 }
  0x88   :  { %v44_v17 = vpack.c.bf16 %v3459_v16, %v3458_v15 }
  0x8a   :  { %3785 = vmatmul.mubr.msk.bf16.vlgmr.msra.gmra.mrb[0].mxu0 %vm77_vm4, %v44_v17 }
  0x8b   :  { %3801 = vmatpush3.bf16.xpose.msra.mxu0 %v257_v18  ;;  %3802 = vmatprep.mubr.msk.bf16.mxu0 %vm4248_vm0, %v4247_v2 }
  0x8c   :  { %3812 = vmatprep.subr.bf16.mxu0 %v4247_v2 }
 0x15d   :  { %v4338_v20 = vpop.f32.mrb[0].mxu0 }
 0x15e   :  { %v3786_v21 = vpop.f32.mrb[1].mxu0 }
 0x15f   :  { %v4340_v22 = vpop.f32.mrb[2].mxu0  ;;  %v4137_v21 = vld [vmem:[%s4986_s2 + $0x18] sm:$0xff]  }
 0x160   :  { %v4344_v23 = vpack.c.bf16 %v4340_v22, %v4338_v20  ;;  %v3787_v24 = vpop.f32.mrb[3].mxu0 }
 0x162   :  { %3791 = vmatmul.mubr.msk.bf16.vlgmr.msra.gmra.mrb[0].mxu1 %vm144_vm1, %v4344_v23  ;;  %3803 = vmatmul.mubr.msk.bf16.vlgmr.msra.gmra.mrb[4].mxu0 %vm144_vm1, %v4344_v23 }
 0x163   :  { %3795 = vmatpush3.bf16.xpose.msra.mxu1 %v203_v25  ;;  %3796 = vmatprep.mubr.msk.bf16.mxu1 %vm4248_vm0, %v4247_v2 }
 0x164   :  { %3806 = vmatprep.subr.bf16.mxu1 %v4247_v2  ;;  %3814 = vmatprep.mubr.msk.bf16.mxu0 %vm4248_vm0, %v4247_v2 }
 0x16a   :  { %3797 = vmatmul.mubr.msk.bf16.vlgmr.msra.gmra.mrb[4].mxu1 %vm144_vm1, %v4344_v23 }
 0x16b   :  { %3808 = vmatprep.mubr.msk.bf16.mxu1 %vm4248_vm0, %v4247_v2 }
 0x235   :  { %v185_v26 = vpop.f32.mrb[0].mxu1  ;;  %v293_v27 = vpop.f32.mrb[4].mxu0 }
 0x236   :  { %v3792_v28 = vpop.f32.mrb[1].mxu1  ;;  %v3804_v29 = vpop.f32.mrb[5].mxu0  ;;  %v294_v44 = vadd.f32 %v3477_v38, %v293_v27  ;;  %v186_v47 = vadd.f32 %v3471_v43, %v185_v26  ;;  %v596_v27 = vsel %vm144_vm1, %v4137_v21, 0 }
 0x237   :  { %v188_v30 = vpop.f32.mrb[2].mxu1  ;;  %v296_v31 = vpop.f32.mrb[6].mxu0  ;;  %v4138_v28 = vld [vmem:[%s4986_s2 + $0x8] sm:$0xff]  }
 0x238   :  { %v3793_v32 = vpop.f32.mrb[3].mxu1  ;;  %v3805_v33 = vpop.f32.mrb[7].mxu0  ;;  %v297_v48 = vadd.f32 %v3477_v38, %v296_v31  ;;  %v423_v50 = vpack.c.bf16 %v294_v44, %v294_v44  ;;  %v189_v51 = vadd.f32 %v3471_v43, %v188_v30  ;;  %v300_v52 = vpack.c.bf16 %v186_v47, %v186_v47  ;;  %v3495_v43 = vld [vmem:[%s4988_s4 + $0xa] ss:$0 sm:$0xff] }
 0x239   :  { %v542_v32 = vsel %vm144_vm1, %v4138_v28, 0  ;;  %v4139_v33 = vld [vmem:[%s4986_s2 + $0x28] sm:$0xff]  }
 0x23a   :  { %v424_v53 = vpack.c.bf16 %v297_v48, %v297_v48  ;;  %v430_v54 = vsel %vm428_vm6, %v423_v50, 0  ;;  %v301_v55 = vpack.c.bf16 %v189_v51, %v189_v51  ;;  %v3492_v51 = vld [vmem:[%s4988_s4 + $0x8] ss:$0 sm:$0xff] }
 0x23c   :  { %v476_v56 = vsel %vm428_vm6, %v424_v53, 0 }
 0x23d   :  { %v239_v35 = vpop.f32.mrb[4].mxu1 }
 0x23e   :  { %v240_v36 = vadd.f32 %v3474_v34, %v239_v35  ;;  %v3798_v37 = vpop.f32.mrb[5].mxu1 }
 0x23f   :  { %v242_v39 = vpop.f32.mrb[6].mxu1 }
 0x240   :  { %v302_v40 = vpack.c.bf16 %v240_v36, %v240_v36  ;;  %v243_v41 = vadd.f32 %v3474_v34, %v242_v39  ;;  %v3799_v42 = vpop.f32.mrb[7].mxu1  ;;  %v650_v34 = vsel %vm144_vm1, %v4139_v33, 0 }
 0x242   :  { %v310_v45 = vsel %vm305_vm5, %v302_v40, 0  ;;  %v303_v46 = vpack.c.bf16 %v243_v41, %v243_v41 }
 0x243   :  { %3807 = vmatpush3.bf16.xpose.msra.mxu1 %v310_v45 }
 0x244   :  { %v356_v49 = vsel %vm305_vm5, %v303_v46, 0  ;;  %3818 = vmatprep.subr.bf16.mxu1 %v4247_v2 }
 0x245   :  { %3813 = vmatpush3.bf16.xpose.msra.mxu0 %v356_v49 }
 0x246   :  { %3824 = vmatprep.subr.bf16.mxu0 %v4247_v2 }
 0x24a   :  { %3809 = vmatmul.mubr.msk.bf16.vlgmr.msra.gmra.mrb[8].mxu1 %vm305_vm5, %v300_v52 }
 0x24b   :  { %3819 = vmatpush3.bf16.msra.mxu1 %v430_v54  ;;  %3820 = vmatprep.mubr.msk.bf16.mxu1 %vm4248_vm0, %v4247_v2 }
 0x24c   :  { %3815 = vmatmul.mubr.msk.bf16.vlgmr.msra.gmra.mrb[8].mxu0 %vm305_vm5, %v301_v55  ;;  %3830 = vmatprep.subr.bf16.mxu1 %v4247_v2 }
 0x24d   :  { %3825 = vmatpush3.bf16.msra.mxu0 %v476_v56  ;;  %3826 = vmatprep.mubr.msk.bf16.mxu0 %vm4248_vm0, %v4247_v2 }
 0x24e   :  { %3836 = vmatprep.subr.bf16.mxu0 %v4247_v2 }
 0x31d   :  { %v346_v57 = vpop.f32.mrb[8].mxu1 }
 0x31e   :  { %v3810_v58 = vpop.f32.mrb[9].mxu1  ;;  %v347_v3 = vadd.f32 %v346_v57, %v304_v59 }
 0x31f   :  { %v349_v60 = vpop.f32.mrb[10].mxu1  ;;  %v392_v61 = vpop.f32.mrb[8].mxu0 }
 0x320   :  { %v393_v62 = vadd.f32 %v392_v61, %v304_v59  ;;  %v3811_v63 = vpop.f32.mrb[11].mxu1  ;;  %v3816_v0 = vpop.f32.mrb[9].mxu0  ;;  %v399_v6 = vsel %vm398_vm7, %v347_v3, -inf  ;;  %v3498_v61 = vld [vmem:[%s4988_s4 + $0xc] ss:$0 sm:$0xff] }
 0x321   :  { %v395_v1 = vpop.f32.mrb[10].mxu0 }
 0x322   :  { %v3817_v4 = vpop.f32.mrb[11].mxu0  ;;  %v402_v5 = vsel %vm398_vm7, %v393_v62, -inf }
 0x323   :  { %403 = vmax.xlane.f32.xlu1 %v402_v5 }
 0x327   :  { %400 = vmax.xlane.f32.xlu1 %v399_v6 }
 0x3b0   :  { %v404_v7 = vpop.xlane.xlu1 %403 }
 0x3b1   :  { %v406_v8 = vsub.f32 %v393_v62, %v404_v7 }
 0x3b3   :  { %v409_v9 = vmul.f32 1.442695, %v406_v8 }
 0x3b4   :  { %v401_v11 = vpop.xlane.xlu1 %400 }
 0x3b5   :  { %4166 = vpow2.f32 %v409_v9  ;;  %v405_v12 = vsub.f32 %v347_v3, %v401_v11 }
 0x3b7   :  { %v407_v13 = vmul.f32 1.442695, %v405_v12  ;;  %v3501_v12 = vld [vmem:[%s4989_s5 + $0x8] sm:$0xff] }
 0x3b9   :  { %4168 = vpow2.f32 %v407_v13 }
 0x3bf   :  { %v4167_v14 = vpop.eup %4166 }
 0x3c0   :  { %v414_v15 = vsel %vm398_vm7, %v4167_v14, 0.0 }
 0x3c1   :  { %415 = vadd.xlane.f32.xlu0 %v414_v15 }
 0x3c3   :  { %v4169_v16 = vpop.eup %4168 }
 0x3c4   :  { %v411_v17 = vsel %vm398_vm7, %v4169_v16, 0.0 }
 0x3c5   :  { %412 = vadd.xlane.f32.xlu1 %v411_v17 }
 0x44e   :  { %v416_v18 = vpop.xlane.xlu0 %415 }
 0x44f   :  { %4170 = vrcp.f32 %v416_v18 }
 0x452   :  { %v413_v19 = vpop.xlane.xlu1 %412 }
 0x453   :  { %4172 = vrcp.f32 %v413_v19 }
 0x459   :  { %v4171_v24 = vpop.eup %4170 }
 0x45a   :  { %v420_v25 = vmul.f32 %v4171_v24, %v4167_v14 }
 0x45c   :  { %v422_v26 = vpack.c.bf16 %v420_v25, %v420_v25 }
 0x45d   :  { %v4173_v29 = vpop.eup %4172 }
 0x45e   :  { %v419_v30 = vmul.f32 %v4173_v29, %v4169_v16  ;;  %3827 = vmatmul.mubr.msk.bf16.vlgmr.msra.gmra.mrb[12].mxu0 %vm398_vm7, %v422_v26 }
 0x45f   :  { %3837 = vmatpush3.bf16.xpose.msra.mxu0 %v596_v27  ;;  %3838 = vmatprep.mubr.msk.bf16.mxu0 %vm4248_vm0, %v4247_v2 }
 0x460   :  { %v421_v31 = vpack.c.bf16 %v419_v30, %v419_v30  ;;  %3848 = vmatprep.subr.bf16.mxu0 %v4247_v2 }
 0x462   :  { %3821 = vmatmul.mubr.msk.bf16.vlgmr.msra.gmra.mrb[12].mxu1 %vm398_vm7, %v421_v31 }
 0x463   :  { %3831 = vmatpush3.bf16.xpose.msra.mxu1 %v542_v32  ;;  %3832 = vmatprep.mubr.msk.bf16.mxu1 %vm4248_vm0, %v4247_v2 }
 0x464   :  { %3842 = vmatprep.subr.bf16.mxu1 %v4247_v2 }
 0x466   :  { %3839 = vmatmul.mubr.msk.bf16.vlgmr.msra.gmra.mrb[16].mxu0 %vm144_vm1, %v4344_v23 }
 0x467   :  { %3850 = vmatprep.mubr.msk.bf16.mxu0 %vm4248_vm0, %v4247_v2 }
 0x46a   :  { %3833 = vmatmul.mubr.msk.bf16.vlgmr.msra.gmra.mrb[16].mxu1 %vm144_vm1, %v4344_v23 }
 0x46b   :  { %3843 = vmatpush3.bf16.xpose.msra.mxu1 %v650_v34  ;;  %3844 = vmatprep.mubr.msk.bf16.mxu1 %vm4248_vm0, %v4247_v2 }
 0x46c   :  { %3854 = vmatprep.subr.bf16.mxu1 %v4247_v2 }
 0x472   :  { %3845 = vmatmul.mubr.msk.bf16.vlgmr.msra.gmra.mrb[20].mxu1 %vm144_vm1, %v4344_v23 }
 0x473   :  { %3856 = vmatprep.mubr.msk.bf16.mxu1 %vm4248_vm0, %v4247_v2 }
 0x531   :  { %v4423_v35 = vpop.f32.mrb[12].mxu0 }
 0x532   :  { %v3828_v36 = vpop.f32.mrb[13].mxu0 }
 0x533   :  { %v515_v37 = vpop.f32.mrb[14].mxu0 }
 0x534   :  { %v3829_v38 = vpop.f32.mrb[15].mxu0 }
 0x535   :  { %v4425_v39 = vpop.f32.mrb[12].mxu1 }
 0x536   :  { %v518_v40 = vpack.c.bf16 %v4423_v35, %v4425_v39  ;;  %v3822_v41 = vpop.f32.mrb[13].mxu1 }
 0x537   :  { %v469_v42 = vpop.f32.mrb[14].mxu1 }
 0x538   :  { %v3823_v23 = vpop.f32.mrb[15].mxu1 }
 0x539   :  { %v632_v44 = vpop.f32.mrb[16].mxu0 }
 0x53a   :  { %v633_v45 = vadd.f32 %v3495_v43, %v632_v44  ;;  %v3840_v46 = vpop.f32.mrb[17].mxu0 }
 0x53b   :  { %v635_v47 = vpop.f32.mrb[18].mxu0 }
 0x53c   :  { %v695_v48 = vpack.c.bf16 %v633_v45, %v633_v45  ;;  %v636_v49 = vadd.f32 %v3495_v43, %v635_v47  ;;  %v3841_v50 = vpop.f32.mrb[19].mxu0  ;;  %v4140_v47 = vld [vmem:[%s4986_s2 + $0x30] sm:$0xff]  }
 0x53d   :  { %v578_v52 = vpop.f32.mrb[16].mxu1 }
 0x53e   :  { %v703_v53 = vsel %vm305_vm5, %v695_v48, 0  ;;  %v696_v54 = vpack.c.bf16 %v636_v49, %v636_v49  ;;  %v3834_v55 = vpop.f32.mrb[17].mxu1  ;;  %v579_v58 = vadd.f32 %v3492_v51, %v578_v52  ;;  %v4141_v49 = vld [vmem:[%s4986_s2 + $0x38] sm:$0xff]  }
 0x53f   :  { %v581_v56 = vpop.f32.mrb[18].mxu1  ;;  %3849 = vmatpush3.bf16.xpose.msra.mxu0 %v703_v53 }
 0x540   :  { %v749_v57 = vsel %vm305_vm5, %v696_v54, 0  ;;  %v3835_v59 = vpop.f32.mrb[19].mxu1  ;;  %3860 = vmatprep.subr.bf16.mxu0 %v4247_v2  ;;  %v582_v60 = vadd.f32 %v3492_v51, %v581_v56  ;;  %v693_v62 = vpack.c.bf16 %v579_v58, %v579_v58 }
 0x541   :  { %3855 = vmatpush3.bf16.xpose.msra.mxu1 %v749_v57 }
 0x542   :  { %3866 = vmatprep.subr.bf16.mxu1 %v4247_v2  ;;  %v694_v0 = vpack.c.bf16 %v582_v60, %v582_v60 }
 0x545   :  { %v686_v63 = vpop.f32.mrb[20].mxu1 }
 0x546   :  { %v687_v1 = vadd.f32 %v3498_v61, %v686_v63  ;;  %v3846_v3 = vpop.f32.mrb[21].mxu1  ;;  %3851 = vmatmul.mubr.msk.bf16.vlgmr.msra.gmra.mrb[20].mxu0 %vm305_vm5, %v693_v62 }
 0x547   :  { %v689_v4 = vpop.f32.mrb[22].mxu1  ;;  %3862 = vmatprep.mubr.msk.bf16.mxu0 %vm4248_vm0, %v4247_v2 }
 0x548   :  { %v815_v5 = vpack.c.bf16 %v687_v1, %v687_v1  ;;  %v690_v6 = vadd.f32 %v3498_v61, %v689_v4  ;;  %v3847_v7 = vpop.f32.mrb[23].mxu1  ;;  %3857 = vmatmul.mubr.msk.bf16.vlgmr.msra.gmra.mrb[24].mxu1 %vm305_vm5, %v694_v0  ;;  %v3510_v61 = vld [vmem:[%s4988_s4 + $0x4] ss:$0 sm:$0xff] }
 0x549   :  { %3868 = vmatprep.mubr.msk.bf16.mxu1 %vm4248_vm0, %v4247_v2 }
 0x54a   :  { %v821_v8 = vsel %vm428_vm6, %v815_v5, 0  ;;  %v816_v9 = vpack.c.bf16 %v690_v6, %v690_v6 }
 0x54b   :  { %3861 = vmatpush3.bf16.msra.mxu0 %v821_v8 }
 0x54c   :  { %v867_v11 = vsel %vm428_vm6, %v816_v9, 0  ;;  %3872 = vmatprep.subr.bf16.mxu0 %v4247_v2 }
 0x54d   :  { %3867 = vmatpush3.bf16.msra.mxu1 %v867_v11  ;;  %v4142_v11 = vld [vmem:[%s4987_s3] sm:$0xff]  }
 0x54e   :  { %3878 = vmatprep.subr.bf16.mxu1 %v4247_v2 }
 0x619   :  { %v739_v13 = vpop.f32.mrb[20].mxu0 }
 0x61a   :  { %v740_v14 = vadd.f32 %v3501_v12, %v739_v13  ;;  %v3852_v15 = vpop.f32.mrb[21].mxu0 }
 0x61b   :  { %v742_v16 = vpop.f32.mrb[22].mxu0  ;;  %v785_v17 = vpop.f32.mrb[24].mxu1 }
 0x61c   :  { %v786_v18 = vadd.f32 %v3501_v12, %v785_v17  ;;  %v3853_v19 = vpop.f32.mrb[23].mxu0  ;;  %v3858_v21 = vpop.f32.mrb[25].mxu1  ;;  %v791_v24 = vsel %vm398_vm7, %v740_v14, -inf  ;;  %v1098_v12 = vsel %vm144_vm1, %v4142_v11, 0 }
 0x61d   :  { %v788_v25 = vpop.f32.mrb[26].mxu1  ;;  %792 = vmax.xlane.f32.xlu1 %v791_v24  ;;  %v4143_v24 = vld [vmem:[%s4987_s3 + $0x8] sm:$0xff]  }
 0x61e   :  { %v3859_v26 = vpop.f32.mrb[27].mxu1  ;;  %v794_v27 = vsel %vm398_vm7, %v786_v18, -inf  ;;  %v1101_v25 = vsel %vm144_vm1, %v4143_v24, 0 }
 0x61f   :  { %v4144_v26 = vld [vmem:[%s4987_s3 + $0x10] sm:$0xff]  }
 0x621   :  { %795 = vmax.xlane.f32.xlu1 %v794_v27  ;;  %v1104_v27 = vsel %vm144_vm1, %v4144_v26, 0 }
 0x6aa   :  { %v793_v28 = vpop.xlane.xlu1 %792 }
 0x6ab   :  { %v797_v29 = vsub.f32 %v740_v14, %v793_v28  ;;  %v4145_v28 = vld [vmem:[%s4987_s3 + $0x18] sm:$0xff]  }
 0x6ad   :  { %v799_v30 = vmul.f32 1.442695, %v797_v29  ;;  %v1107_v29 = vsel %vm144_vm1, %v4145_v28, 0 }
 0x6ae   :  { %v796_v31 = vpop.xlane.xlu1 %795 }
 0x6af   :  { %4174 = vpow2.f32 %v799_v30  ;;  %v798_v32 = vsub.f32 %v786_v18, %v796_v31 }
 0x6b1   :  { %v801_v33 = vmul.f32 1.442695, %v798_v32 }
 0x6b3   :  { %4176 = vpow2.f32 %v801_v33 }
 0x6b9   :  { %v4175_v34 = vpop.eup %4174 }
 0x6ba   :  { %v803_v36 = vsel %vm398_vm7, %v4175_v34, 0.0 }
 0x6bb   :  { %804 = vadd.xlane.f32.xlu1 %v803_v36 }
 0x6bd   :  { %v4177_v37 = vpop.eup %4176 }
 0x6be   :  { %v806_v38 = vsel %vm398_vm7, %v4177_v37, 0.0 }
 0x6bf   :  { %807 = vadd.xlane.f32.xlu1 %v806_v38 }
 0x748   :  { %v805_v41 = vpop.xlane.xlu1 %804 }
 0x749   :  { %4178 = vrcp.f32 %v805_v41  ;;  %v3511_v41 = vld [vmem:[%s4988_s4] ss:$0 sm:$0xff] }
 0x74c   :  { %v808_v42 = vpop.xlane.xlu1 %807 }
 0x74d   :  { %4180 = vrcp.f32 %v808_v42 }
 0x753   :  { %v4179_v43 = vpop.eup %4178 }
 0x754   :  { %v811_v23 = vmul.f32 %v4179_v43, %v4175_v34 }
 0x756   :  { %v813_v44 = vpack.c.bf16 %v811_v23, %v811_v23 }
 0x757   :  { %v4181_v45 = vpop.eup %4180 }
 0x758   :  { %v812_v46 = vmul.f32 %v4181_v45, %v4177_v37  ;;  %3863 = vmatmul.mubr.msk.bf16.vlgmr.msra.gmra.mrb[24].mxu0 %vm398_vm7, %v813_v44  ;;  %v3512_v44 = vld [vmem:[%s4988_s4 + $0x1] ss:$0 sm:$0xff] }
 0x759   :  { %3874 = vmatprep.mubr.msk.bf16.mxu0 %vm4248_vm0, %v4247_v2  ;;  %3873 = vmatpush3.bf16.msra.mxu0 %v4141_v49  ;;  %v4146_v49 = vld [vmem:[%s4987_s3 + $0x20] sm:$0xff]  }
 0x75a   :  { %v814_v48 = vpack.c.bf16 %v812_v46, %v812_v46  ;;  %3884 = vmatprep.subr.bf16.mxu0 %v4247_v2 }
 0x75c   :  { %3869 = vmatmul.mubr.msk.bf16.vlgmr.msra.gmra.mrb[28].mxu1 %vm398_vm7, %v814_v48 }
 0x75d   :  { %3879 = vmatpush3.bf16.msra.mxu1 %v4140_v47  ;;  %3880 = vmatprep.mubr.msk.bf16.mxu1 %vm4248_vm0, %v4247_v2 }
 0x75e   :  { %3896 = vmatprep.subr.bf16.mxu1 %v4247_v2 }
 0x764   :  { %3881 = vmatmul.mubr.msk.bf16.vlgmr.msra.gmra.mrb[32].mxu1 %vm305_vm5, %v518_v40 }
 0x765   :  { %3904 = vmatprep.mubr.msk.bf16.mxu1 %vm4248_vm0, %v4247_v2  ;;  %3897 = vmatpush3.bf16.msra.mxu1 %v4146_v49  ;;  %v3533_v49 = vld [vmem:[%s4988_s4 + $0x2] ss:$0 sm:$0xff] }
 0x766   :  { %3898 = vmatprep.subr.bf16.mxu1 %v4247_v2 }
 0x82b   :  { %v857_v50 = vpop.f32.mrb[24].mxu0 }
 0x82c   :  { %v3864_v51 = vpop.f32.mrb[25].mxu0 }
 0x82d   :  { %v860_v52 = vpop.f32.mrb[26].mxu0  ;;  %v4148_v51 = vld [vmem:[%s4987_s3 + $0x30] sm:$0xff]  }
 0x82e   :  { %v3865_v53 = vpop.f32.mrb[27].mxu0  ;;  %v4149_v52 = vld [vmem:[%s4987_s3 + $0x38] sm:$0xff]  }
 0x82f   :  { %v903_v54 = vpop.f32.mrb[28].mxu1  ;;  %v3513_v53 = vld [vmem:[%s4988_s4 + $0x5] ss:$0 sm:$0xff] }
 0x830   :  { %v909_v55 = vpack.c.bf16 %v903_v54, %v857_v50  ;;  %v3870_v56 = vpop.f32.mrb[29].mxu1  ;;  %v4147_v50 = vld [vmem:[%s4987_s3 + $0x28] sm:$0xff]  }
 0x831   :  { %v906_v35 = vpop.f32.mrb[30].mxu1  ;;  %3899 = vmatpush3.bf16.msra.mxu1 %v4147_v50 }
 0x832   :  { %v3871_v39 = vpop.f32.mrb[31].mxu1  ;;  %3875 = vmatmul.mubr.msk.bf16.vlgmr.msra.gmra.mrb[28].mxu0 %vm305_vm5, %v909_v55  ;;  %3900 = vmatprep.subr.bf16.mxu1 %v4247_v2 }
 0x833   :  { %3892 = vmatprep.mubr.msk.bf16.mxu0 %vm4248_vm0, %v4247_v2  ;;  %3885 = vmatpush3.bf16.xpose.msra.mxu0 %v1098_v12 }
 0x834   :  { %3886 = vmatprep.subr.bf16.mxu0 %v4247_v2 }
 0x835   :  { %3901 = vmatpush3.bf16.msra.mxu1 %v4148_v51 }
 0x836   :  { %3902 = vmatprep.subr.bf16.mxu1 %v4247_v2 }
 0x837   :  { %v1003_v40 = vpop.f32.mrb[32].mxu1 }
 0x838   :  { %v3882_v57 = vpop.f32.mrb[33].mxu1 }
 0x839   :  { %v1006_v58 = vpop.f32.mrb[34].mxu1  ;;  %3903 = vmatpush3.bf16.msra.mxu1 %v4149_v52 }
 0x83a   :  { %v3883_v59 = vpop.f32.mrb[35].mxu1  ;;  %3908 = vmatprep.subr.bf16.mxu1 %v4247_v2 }
 0x83b   :  { %3887 = vmatpush3.bf16.xpose.msra.mxu0 %v1101_v25 }
 0x83c   :  { %3888 = vmatprep.subr.bf16.mxu0 %v4247_v2 }
 0x843   :  { %3889 = vmatpush3.bf16.xpose.msra.mxu0 %v1104_v27 }
 0x844   :  { %3890 = vmatprep.subr.bf16.mxu0 %v4247_v2 }
 0x84b   :  { %3891 = vmatpush3.bf16.xpose.msra.mxu0 %v1107_v29 }
 0x84c   :  { %3920 = vmatprep.subr.bf16.mxu0 %v4247_v2 }
 0x905   :  { %v953_v60 = vpop.f32.mrb[28].mxu0 }
 0x906   :  { %v1004_v62 = vadd.f32 %v1003_v40, %v953_v60  ;;  %v3876_v63 = vpop.f32.mrb[29].mxu0 }
 0x907   :  { %v956_v0 = vpop.f32.mrb[30].mxu0 }
 0x908   :  { %v1015_v1 = vadd.f32 %v3510_v61, %v1004_v62  ;;  %v1007_v3 = vadd.f32 %v1006_v58, %v956_v0  ;;  %v3877_v4 = vpop.f32.mrb[31].mxu0 }
 0x90a   :  { %v1016_v5 = vadd.f32 %v3510_v61, %v1007_v3  ;;  %v1017_v6 = vadd.f32 %v1015_v1, %v4338_v20 }
 0x90c   :  { %v1021_v7 = vsel %vm144_vm1, %v1017_v6, 0.0  ;;  %v1018_v8 = vadd.f32 %v1016_v5, %v4340_v22 }
 0x90d   :  { %1022 = vadd.xlane.f32.xlu1 %v1021_v7 }
 0x90e   :  { %v1024_v9 = vsel %vm144_vm1, %v1018_v8, 0.0 }
 0x911   :  { %1025 = vadd.xlane.f32.xlu1 %v1024_v9 }
 0x99a   :  { %v1023_v13 = vpop.xlane.xlu1 %1022 }
 0x99b   :  { %v1028_v14 = vmul.f32 0.03125, %v1023_v13 }
 0x99d   :  { %v1030_v20 = vsub.f32 %v1017_v6, %v1028_v14  ;;  %v3527_v14 = vld [vmem:[%s4988_s4 + $0x6] ss:$0 sm:$0xff] }
 0x99e   :  { %v1026_v15 = vpop.xlane.xlu1 %1025 }
 0x99f   :  { %v1029_v16 = vmul.f32 0.03125, %v1026_v15  ;;  %v1032_v17 = vmul.f32 %v1030_v20, %v1030_v20 }
 0x9a1   :  { %v1031_v22 = vsub.f32 %v1018_v8, %v1029_v16  ;;  %v1034_v18 = vsel %vm144_vm1, %v1032_v17, 0.0 }
 0x9a2   :  { %1035 = vadd.xlane.f32.xlu1 %v1034_v18 }
 0x9a3   :  { %v1033_v19 = vmul.f32 %v1031_v22, %v1031_v22 }
 0x9a5   :  { %v1037_v21 = vsel %vm144_vm1, %v1033_v19, 0.0 }
 0x9a6   :  { %1038 = vadd.xlane.f32.xlu0 %v1037_v21 }
 0xa2f   :  { %v1036_v30 = vpop.xlane.xlu1 %1035 }
 0xa30   :  { %v1040_v31 = vmul.f32 0.03125, %v1036_v30 }
 0xa32   :  { %v1042_v32 = vadd.f32 1e-12, %v1040_v31 }
 0xa33   :  { %v1039_v33 = vpop.xlane.xlu0 %1038 }
 0xa34   :  { %4182 = vrsqrt.f32 %v1042_v32  ;;  %v1041_v34 = vmul.f32 0.03125, %v1039_v33 }
 0xa36   :  { %v1043_v36 = vadd.f32 1e-12, %v1041_v34 }
 0xa38   :  { %4184 = vrsqrt.f32 %v1043_v36 }
 0xa3e   :  { %v4183_v37 = vpop.eup %4182 }
 0xa3f   :  { %v1046_v38 = vmul.f32 %v4183_v37, %v1030_v20  ;;  %v4150_v37 = vld [vmem:[%s4986_s2 + $0x40] sm:$0xff]  }
 0xa41   :  { %v1052_v43 = vmul.f32 %v3511_v41, %v1046_v38  ;;  %v4151_v38 = vld [vmem:[%s4986_s2 + $0x60] sm:$0xff]  }
 0xa42   :  { %v4185_v42 = vpop.eup %4184 }
 0xa43   :  { %v1047_v23 = vmul.f32 %v4185_v42, %v1031_v22  ;;  %v1058_v46 = vadd.f32 %v3512_v44, %v1052_v43  ;;  %v1429_v42 = vsel %vm144_vm1, %v4151_v38, 0 }
 0xa45   :  { %v1053_v45 = vmul.f32 %v3511_v41, %v1047_v23  ;;  %v1321_v41 = vsel %vm144_vm1, %v4150_v37, 0 }
 0xa47   :  { %v1059_v47 = vadd.f32 %v3512_v44, %v1053_v45 }
 0xa49   :  { %v1060_v48 = vpack.c.bf16 %v1059_v47, %v1058_v46 }
 0xa4b   :  { %3893 = vmatmul.mubr.msk.bf16.vlgmr.msra.gmra.mrb[32].mxu0 %vm144_vm1, %v1060_v48 }
 0xa4c   :  { %3922 = vmatprep.mubr.msk.bf16.mxu0 %vm4248_vm0, %v4247_v2  ;;  %3921 = vmatpush3.bf16.xpose.msra.mxu0 %v1429_v42 }
 0xa4d   :  { %3932 = vmatprep.subr.bf16.mxu0 %v4247_v2 }
 0xb1e   :  { %v1143_v54 = vpop.f32.mrb[32].mxu0 }
 0xb1f   :  { %v1144_v55 = vadd.f32 %v3513_v53, %v1143_v54  ;;  %v3894_v56 = vpop.f32.mrb[33].mxu0  ;;  %v3534_v54 = vld [vmem:[%s4988_s4 + $0x3] ss:$0 sm:$0xff] }
 0xb20   :  { %v1146_v35 = vpop.f32.mrb[34].mxu0  ;;  %v4152_v56 = vld [vmem:[%s4986_s2 + $0x50] sm:$0xff]  }
 0xb21   :  { %v1150_v39 = vmul.f32 %v1144_v55, %v1144_v55  ;;  %v1147_v40 = vadd.f32 %v3513_v53, %v1146_v35  ;;  %v3895_v57 = vpop.f32.mrb[35].mxu0 }
 0xb22   :  { %v1375_v57 = vsel %vm144_vm1, %v4152_v56, 0 }
 0xb23   :  { %v1152_v58 = vmul.f32 %v1150_v39, %v1144_v55  ;;  %v1151_v59 = vmul.f32 %v1147_v40, %v1147_v40 }
 0xb25   :  { %v1154_v60 = vmul.f32 0.044715, %v1152_v58  ;;  %v1153_v61 = vmul.f32 %v1151_v59, %v1147_v40 }
 0xb27   :  { %v1156_v62 = vadd.f32 %v1154_v60, %v1144_v55  ;;  %v1155_v63 = vmul.f32 0.044715, %v1153_v61 }
 0xb29   :  { %v1158_v0 = vmul.f32 0.7978846, %v1156_v62  ;;  %v1157_v1 = vadd.f32 %v1155_v63, %v1147_v40 }
 0xb2b   :  { %4186 = vtanh.f32 %v1158_v0  ;;  %v1159_v3 = vmul.f32 0.7978846, %v1157_v1 }
 0xb2d   :  { %4188 = vtanh.f32 %v1159_v3  ;;  %v3548_v3 = vld [vmem:[%s4988_s4 + $0x19] ss:$0 sm:$0xff] }
 0xb35   :  { %v4187_v4 = vpop.eup %4186 }
 0xb36   :  { %v1162_v5 = vadd.f32 1.0, %v4187_v4 }
 0xb37   :  { %v4189_v6 = vpop.eup %4188 }
 0xb38   :  { %v1164_v7 = vmul.f32 0.5, %v1162_v5  ;;  %v1163_v8 = vadd.f32 1.0, %v4189_v6 }
 0xb3a   :  { %v1165_v9 = vmul.f32 0.5, %v1163_v8  ;;  %v1166_v11 = vmul.f32 %v1164_v7, %v1144_v55  ;;  %v3552_v7 = vld [vmem:[%s4988_s4 + $0x1b] ss:$0 sm:$0xff] }
 0xb3c   :  { %v1167_v12 = vmul.f32 %v1165_v9, %v1147_v40 }
 0xb3e   :  { %v1168_v13 = vpack.c.bf16 %v1167_v12, %v1166_v11 }
 0xb40   :  { %3905 = vmatmul.mubr.msk.bf16.vlgmr.msra.gmra.mrb[36].mxu1 %vm77_vm4, %v1168_v13  ;;  %v3544_v13 = vld [vmem:[%s4988_s4 + $0x17] ss:$0 sm:$0xff] }
 0xb41   :  { %3910 = vmatprep.mubr.msk.bf16.mxu1 %vm4248_vm0, %v4247_v2  ;;  %3909 = vmatpush3.bf16.xpose.msra.mxu1 %v1321_v41 }
 0xb42   :  { %3914 = vmatprep.subr.bf16.mxu1 %v4247_v2 }
 0xc13   :  { %v1244_v20 = vpop.f32.mrb[36].mxu1 }
 0xc14   :  { %v1245_v15 = vadd.f32 %v3527_v14, %v1244_v20  ;;  %v3906_v16 = vpop.f32.mrb[37].mxu1 }
 0xc15   :  { %v1247_v17 = vpop.f32.mrb[38].mxu1 }
 0xc16   :  { %v1248_v22 = vadd.f32 %v3527_v14, %v1247_v17  ;;  %v3907_v18 = vpop.f32.mrb[39].mxu1  ;;  %v1251_v19 = vadd.f32 %v1245_v15, %v1058_v46 }
 0xc18   :  { %v1255_v21 = vsel %vm144_vm1, %v1251_v19, 0.0  ;;  %v1252_v24 = vadd.f32 %v1248_v22, %v1059_v47 }
 0xc19   :  { %1256 = vadd.xlane.f32.xlu1 %v1255_v21 }
 0xc1a   :  { %v1258_v25 = vsel %vm144_vm1, %v1252_v24, 0.0 }
 0xc1b   :  { %1259 = vadd.xlane.f32.xlu0 %v1258_v25 }
 0xca6   :  { %v1257_v26 = vpop.xlane.xlu1 %1256 }
 0xca7   :  { %v1261_v27 = vmul.f32 0.03125, %v1257_v26 }
 0xca8   :  { %v1260_v28 = vpop.xlane.xlu0 %1259 }
 0xca9   :  { %v1263_v29 = vsub.f32 %v1251_v19, %v1261_v27  ;;  %v1262_v30 = vmul.f32 0.03125, %v1260_v28  ;;  %v3555_v28 = vld [vmem:[%s4989_s5 + $0x10] sm:$0xff] }
 0xcab   :  { %v1264_v31 = vsub.f32 %v1252_v24, %v1262_v30  ;;  %v1265_v32 = vmul.f32 %v1263_v29, %v1263_v29 }
 0xcad   :  { %v1267_v33 = vsel %vm144_vm1, %v1265_v32, 0.0  ;;  %v1266_v34 = vmul.f32 %v1264_v31, %v1264_v31 }
 0xcae   :  { %1268 = vadd.xlane.f32.xlu1 %v1267_v33 }
 0xcaf   :  { %v1270_v36 = vsel %vm144_vm1, %v1266_v34, 0.0 }
 0xcb0   :  { %1271 = vadd.xlane.f32.xlu0 %v1270_v36 }
 0xd3b   :  { %v1269_v43 = vpop.xlane.xlu1 %1268 }
 0xd3c   :  { %v1273_v23 = vmul.f32 0.03125, %v1269_v43 }
 0xd3d   :  { %v1272_v44 = vpop.xlane.xlu0 %1271 }
 0xd3e   :  { %v1275_v45 = vadd.f32 1e-12, %v1273_v23  ;;  %v1274_v46 = vmul.f32 0.03125, %v1272_v44 }
 0xd40   :  { %4190 = vrsqrt.f32 %v1275_v45  ;;  %v1276_v47 = vadd.f32 1e-12, %v1274_v46 }
 0xd42   :  { %4192 = vrsqrt.f32 %v1276_v47 }
 0xd4a   :  { %v4191_v48 = vpop.eup %4190 }
 0xd4b   :  { %v1279_v50 = vmul.f32 %v4191_v48, %v1263_v29 }
 0xd4c   :  { %v4193_v51 = vpop.eup %4192 }
 0xd4d   :  { %v1285_v52 = vmul.f32 %v3533_v49, %v1279_v50  ;;  %v1280_v53 = vmul.f32 %v4193_v51, %v1264_v31 }
 0xd4f   :  { %v1286_v55 = vmul.f32 %v3533_v49, %v1280_v53  ;;  %v4568_v35 = vadd.f32 %v3534_v54, %v1285_v52 }
 0xd51   :  { %v4570_v39 = vadd.f32 %v3534_v54, %v1286_v55  ;;  %v4153_v55 = vld [vmem:[%s4986_s2 + $0x48] sm:$0xff]  }
 0xd53   :  { %v4574_v40 = vpack.c.bf16 %v4570_v39, %v4568_v35 }
 0xd55   :  { %3911 = vmatmul.mubr.msk.bf16.vlgmr.msra.gmra.mrb[40].mxu1 %vm144_vm1, %v4574_v40  ;;  %3923 = vmatmul.mubr.msk.bf16.vlgmr.msra.gmra.mrb[36].mxu0 %vm144_vm1, %v4574_v40 }
 0xd56   :  { %3915 = vmatpush3.bf16.xpose.msra.mxu1 %v1375_v57  ;;  %3916 = vmatprep.mubr.msk.bf16.mxu1 %vm4248_vm0, %v4247_v2 }
 0xd57   :  { %3926 = vmatprep.subr.bf16.mxu1 %v4247_v2  ;;  %3934 = vmatprep.mubr.msk.bf16.mxu0 %vm4248_vm0, %v4247_v2 }
 0xd5d   :  { %3917 = vmatmul.mubr.msk.bf16.vlgmr.msra.gmra.mrb[44].mxu1 %vm144_vm1, %v4574_v40 }
 0xd5e   :  { %3928 = vmatprep.mubr.msk.bf16.mxu1 %vm4248_vm0, %v4247_v2 }
 0xe28   :  { %v1357_v58 = vpop.f32.mrb[40].mxu1  ;;  %v1465_v59 = vpop.f32.mrb[36].mxu0 }
 0xe29   :  { %v3912_v60 = vpop.f32.mrb[41].mxu1  ;;  %v3924_v61 = vpop.f32.mrb[37].mxu0  ;;  %v1466_v14 = vadd.f32 %v3552_v7, %v1465_v59  ;;  %v1358_v16 = vadd.f32 %v3544_v13, %v1357_v58  ;;  %v4154_v58 = vld [vmem:[%s4986_s2 + $0x58] sm:$0xff]  }
 0xe2a   :  { %v1360_v62 = vpop.f32.mrb[42].mxu1  ;;  %v1468_v63 = vpop.f32.mrb[38].mxu0 }
 0xe2b   :  { %v3913_v0 = vpop.f32.mrb[43].mxu1  ;;  %v3925_v1 = vpop.f32.mrb[39].mxu0  ;;  %v1469_v17 = vadd.f32 %v3552_v7, %v1468_v63  ;;  %v1594_v18 = vpack.c.bf16 %v1466_v14, %v1466_v14  ;;  %v1361_v19 = vadd.f32 %v3544_v13, %v1360_v62  ;;  %v1472_v21 = vpack.c.bf16 %v1358_v16, %v1358_v16 }
 0xe2c   :  { %v1712_v62 = vsel %vm144_vm1, %v4153_v55, 0  ;;  %v1766_v0 = vsel %vm144_vm1, %v4154_v58, 0  ;;  %v4155_v1 = vld [vmem:[%s4986_s2 + $0x68] sm:$0xff]  }
 0xe2d   :  { %v1595_v24 = vpack.c.bf16 %v1469_v17, %v1469_v17  ;;  %v1600_v25 = vsel %vm428_vm6, %v1594_v18, 0  ;;  %v1473_v26 = vpack.c.bf16 %v1361_v19, %v1361_v19 }
 0xe2f   :  { %v1646_v27 = vsel %vm428_vm6, %v1595_v24, 0 }
 0xe30   :  { %v1411_v4 = vpop.f32.mrb[44].mxu1 }
 0xe31   :  { %v1412_v5 = vadd.f32 %v3548_v3, %v1411_v4  ;;  %v3918_v6 = vpop.f32.mrb[45].mxu1 }
 0xe32   :  { %v1414_v8 = vpop.f32.mrb[46].mxu1 }
 0xe33   :  { %v1474_v9 = vpack.c.bf16 %v1412_v5, %v1412_v5  ;;  %v1415_v11 = vadd.f32 %v3548_v3, %v1414_v8  ;;  %v3919_v12 = vpop.f32.mrb[47].mxu1  ;;  %v1820_v3 = vsel %vm144_vm1, %v4155_v1, 0 }
 0xe35   :  { %v1482_v20 = vsel %vm305_vm5, %v1474_v9, 0  ;;  %v1475_v15 = vpack.c.bf16 %v1415_v11, %v1415_v11 }
 0xe36   :  { %3927 = vmatpush3.bf16.xpose.msra.mxu1 %v1482_v20 }
 0xe37   :  { %v1528_v22 = vsel %vm305_vm5, %v1475_v15, 0  ;;  %3938 = vmatprep.subr.bf16.mxu1 %v4247_v2 }
 0xe38   :  { %3933 = vmatpush3.bf16.xpose.msra.mxu0 %v1528_v22 }
 0xe39   :  { %3944 = vmatprep.subr.bf16.mxu0 %v4247_v2 }
 0xe3d   :  { %3929 = vmatmul.mubr.msk.bf16.vlgmr.msra.gmra.mrb[48].mxu1 %vm305_vm5, %v1472_v21 }
 0xe3e   :  { %3939 = vmatpush3.bf16.msra.mxu1 %v1600_v25  ;;  %3940 = vmatprep.mubr.msk.bf16.mxu1 %vm4248_vm0, %v4247_v2 }
 0xe3f   :  { %3935 = vmatmul.mubr.msk.bf16.vlgmr.msra.gmra.mrb[40].mxu0 %vm305_vm5, %v1473_v26  ;;  %3950 = vmatprep.subr.bf16.mxu1 %v4247_v2  ;;  %v3569_v26 = vld [vmem:[%s4988_s4 + $0x18] ss:$0 sm:$0xff] }
 0xe40   :  { %3945 = vmatpush3.bf16.msra.mxu0 %v1646_v27  ;;  %3946 = vmatprep.mubr.msk.bf16.mxu0 %vm4248_vm0, %v4247_v2  ;;  %v3577_v27 = vld [vmem:[%s4988_s4 + $0x1c] ss:$0 sm:$0xff] }
 0xe41   :  { %3956 = vmatprep.subr.bf16.mxu0 %v4247_v2 }
 0xf10   :  { %v1518_v29 = vpop.f32.mrb[48].mxu1 }
 0xf11   :  { %v1519_v30 = vadd.f32 %v3555_v28, %v1518_v29  ;;  %v3930_v31 = vpop.f32.mrb[49].mxu1 }
 0xf12   :  { %v1521_v32 = vpop.f32.mrb[50].mxu1  ;;  %v1564_v33 = vpop.f32.mrb[40].mxu0 }
 0xf13   :  { %v1565_v34 = vadd.f32 %v3555_v28, %v1564_v33  ;;  %v3931_v36 = vpop.f32.mrb[51].mxu1  ;;  %v3936_v37 = vpop.f32.mrb[41].mxu0  ;;  %v1570_v38 = vsel %vm398_vm7, %v1519_v30, -inf }
 0xf14   :  { %1571 = vmax.xlane.f32.xlu0 %v1570_v38  ;;  %v1567_v41 = vpop.f32.mrb[42].mxu0 }
 0xf15   :  { %v3937_v42 = vpop.f32.mrb[43].mxu0  ;;  %v1573_v43 = vsel %vm398_vm7, %v1565_v34, -inf }
 0xf16   :  { %1574 = vmax.xlane.f32.xlu1 %v1573_v43 }
 0xfa1   :  { %v1572_v23 = vpop.xlane.xlu0 %1571 }
 0xfa2   :  { %v1576_v44 = vsub.f32 %v1519_v30, %v1572_v23 }
 0xfa3   :  { %v1575_v45 = vpop.xlane.xlu1 %1574 }
 0xfa4   :  { %v1578_v46 = vmul.f32 1.442695, %v1576_v44  ;;  %v1577_v47 = vsub.f32 %v1565_v34, %v1575_v45 }
 0xfa6   :  { %4194 = vpow2.f32 %v1578_v46  ;;  %v1580_v48 = vmul.f32 1.442695, %v1577_v47  ;;  %v3580_v47 = vld [vmem:[%s4989_s5 + $0x18] sm:$0xff] }
 0xfa8   :  { %4196 = vpow2.f32 %v1580_v48 }
 0xfb0   :  { %v4195_v49 = vpop.eup %4194 }
 0xfb1   :  { %v1582_v50 = vsel %vm398_vm7, %v4195_v49, 0.0 }
 0xfb2   :  { %v4197_v51 = vpop.eup %4196  ;;  %1583 = vadd.xlane.f32.xlu0 %v1582_v50 }
 0xfb3   :  { %v1585_v52 = vsel %vm398_vm7, %v4197_v51, 0.0 }
 0xfb4   :  { %1586 = vadd.xlane.f32.xlu1 %v1585_v52 }
0x103f   :  { %v1584_v53 = vpop.xlane.xlu0 %1583 }
0x1040   :  { %4198 = vrcp.f32 %v1584_v53 }
0x1041   :  { %v1587_v54 = vpop.xlane.xlu1 %1586 }
0x1042   :  { %4200 = vrcp.f32 %v1587_v54 }
0x104a   :  { %v4199_v56 = vpop.eup %4198 }
0x104b   :  { %v1590_v57 = vmul.f32 %v4199_v56, %v4195_v49 }
0x104c   :  { %v4201_v59 = vpop.eup %4200 }
0x104d   :  { %v1591_v60 = vmul.f32 %v4201_v59, %v4197_v51  ;;  %v1592_v61 = vpack.c.bf16 %v1590_v57, %v1590_v57 }
0x104f   :  { %3941 = vmatmul.mubr.msk.bf16.vlgmr.msra.gmra.mrb[52].mxu1 %vm398_vm7, %v1592_v61  ;;  %v1593_v63 = vpack.c.bf16 %v1591_v60, %v1591_v60 }
0x1050   :  { %3951 = vmatpush3.bf16.xpose.msra.mxu1 %v1712_v62  ;;  %3952 = vmatprep.mubr.msk.bf16.mxu1 %vm4248_vm0, %v4247_v2 }
0x1051   :  { %3947 = vmatmul.mubr.msk.bf16.vlgmr.msra.gmra.mrb[44].mxu0 %vm398_vm7, %v1593_v63  ;;  %3962 = vmatprep.subr.bf16.mxu1 %v4247_v2 }
0x1052   :  { %3957 = vmatpush3.bf16.xpose.msra.mxu0 %v1766_v0  ;;  %3958 = vmatprep.mubr.msk.bf16.mxu0 %vm4248_vm0, %v4247_v2 }
0x1053   :  { %3968 = vmatprep.subr.bf16.mxu0 %v4247_v2 }
0x1057   :  { %3953 = vmatmul.mubr.msk.bf16.vlgmr.msra.gmra.mrb[56].mxu1 %vm144_vm1, %v4574_v40 }
0x1058   :  { %3963 = vmatpush3.bf16.xpose.msra.mxu1 %v1820_v3  ;;  %3964 = vmatprep.mubr.msk.bf16.mxu1 %vm4248_vm0, %v4247_v2 }
0x1059   :  { %3959 = vmatmul.mubr.msk.bf16.vlgmr.msra.gmra.mrb[48].mxu0 %vm144_vm1, %v4574_v40  ;;  %3974 = vmatprep.subr.bf16.mxu1 %v4247_v2 }
0x105a   :  { %3970 = vmatprep.mubr.msk.bf16.mxu0 %vm4248_vm0, %v4247_v2 }
0x105f   :  { %3965 = vmatmul.mubr.msk.bf16.vlgmr.msra.gmra.mrb[60].mxu1 %vm144_vm1, %v4574_v40  ;;  %v3573_v40 = vld [vmem:[%s4988_s4 + $0x1a] ss:$0 sm:$0xff] }
0x1060   :  { %3976 = vmatprep.mubr.msk.bf16.mxu1 %vm4248_vm0, %v4247_v2 }
0x1122   :  { %v4653_v4 = vpop.f32.mrb[52].mxu1 }
0x1123   :  { %v3942_v5 = vpop.f32.mrb[53].mxu1 }
0x1124   :  { %v1639_v6 = vpop.f32.mrb[54].mxu1  ;;  %v4655_v7 = vpop.f32.mrb[44].mxu0 }
0x1125   :  { %v1688_v8 = vpack.c.bf16 %v4655_v7, %v4653_v4  ;;  %v3943_v9 = vpop.f32.mrb[55].mxu1  ;;  %v3948_v11 = vpop.f32.mrb[45].mxu0 }
0x1126   :  { %v1685_v12 = vpop.f32.mrb[46].mxu0 }
0x1127   :  { %v3949_v13 = vpop.f32.mrb[47].mxu0 }
0x112a   :  { %v1748_v14 = vpop.f32.mrb[56].mxu1 }
0x112b   :  { %v3954_v20 = vpop.f32.mrb[57].mxu1  ;;  %v1749_v31 = vadd.f32 %v3569_v26, %v1748_v14 }
0x112c   :  { %v1751_v15 = vpop.f32.mrb[58].mxu1  ;;  %v1802_v16 = vpop.f32.mrb[48].mxu0  ;;  %v4157_v20 = vld [vmem:[%s4986_s2 + $0x78] sm:$0xff]  }
0x112d   :  { %v1803_v17 = vadd.f32 %v3573_v40, %v1802_v16  ;;  %v3955_v22 = vpop.f32.mrb[59].mxu1  ;;  %v3960_v18 = vpop.f32.mrb[49].mxu0  ;;  %v1752_v37 = vadd.f32 %v3569_v26, %v1751_v15  ;;  %v1863_v43 = vpack.c.bf16 %v1749_v31, %v1749_v31 }
0x112e   :  { %v1805_v19 = vpop.f32.mrb[50].mxu0 }
0x112f   :  { %v1865_v21 = vpack.c.bf16 %v1803_v17, %v1803_v17  ;;  %v1806_v24 = vadd.f32 %v3573_v40, %v1805_v19  ;;  %v3961_v25 = vpop.f32.mrb[51].mxu0  ;;  %v1864_v44 = vpack.c.bf16 %v1752_v37, %v1752_v37  ;;  %v4156_v17 = vld [vmem:[%s4986_s2 + $0x70] sm:$0xff]  }
0x1131   :  { %v1873_v28 = vsel %vm305_vm5, %v1865_v21, 0  ;;  %v1866_v29 = vpack.c.bf16 %v1806_v24, %v1806_v24 }
0x1132   :  { %v1856_v30 = vpop.f32.mrb[60].mxu1  ;;  %3969 = vmatpush3.bf16.xpose.msra.mxu0 %v1873_v28 }
0x1133   :  { %v1919_v32 = vsel %vm305_vm5, %v1866_v29, 0  ;;  %v1857_v33 = vadd.f32 %v3577_v27, %v1856_v30  ;;  %v3966_v34 = vpop.f32.mrb[61].mxu1  ;;  %3980 = vmatprep.subr.bf16.mxu0 %v4247_v2 }
0x1134   :  { %v1859_v36 = vpop.f32.mrb[62].mxu1  ;;  %3975 = vmatpush3.bf16.xpose.msra.mxu1 %v1919_v32  ;;  %v3590_v32 = vld [vmem:[%s4988_s4 + $0x14] ss:$0 sm:$0xff] }
0x1135   :  { %v1985_v38 = vpack.c.bf16 %v1857_v33, %v1857_v33  ;;  %v1860_v41 = vadd.f32 %v3577_v27, %v1859_v36  ;;  %v3967_v42 = vpop.f32.mrb[63].mxu1  ;;  %3986 = vmatprep.subr.bf16.mxu1 %v4247_v2 }
0x1137   :  { %v1986_v23 = vpack.c.bf16 %v1860_v41, %v1860_v41  ;;  %v1991_v45 = vsel %vm428_vm6, %v1985_v38, 0 }
0x1139   :  { %3971 = vmatmul.mubr.msk.bf16.vlgmr.msra.gmra.mrb[52].mxu0 %vm305_vm5, %v1863_v43  ;;  %v2037_v46 = vsel %vm428_vm6, %v1986_v23, 0 }
0x113a   :  { %3981 = vmatpush3.bf16.msra.mxu0 %v1991_v45  ;;  %3982 = vmatprep.mubr.msk.bf16.mxu0 %vm4248_vm0, %v4247_v2 }
0x113b   :  { %3977 = vmatmul.mubr.msk.bf16.vlgmr.msra.gmra.mrb[64].mxu1 %vm305_vm5, %v1864_v44  ;;  %3992 = vmatprep.subr.bf16.mxu0 %v4247_v2 }
0x113c   :  { %3987 = vmatpush3.bf16.msra.mxu1 %v2037_v46  ;;  %3988 = vmatprep.mubr.msk.bf16.mxu1 %vm4248_vm0, %v4247_v2  ;;  %v4158_v46 = vld [vmem:[%s4987_s3 + $0x40] sm:$0xff]  }
0x113d   :  { %3998 = vmatprep.subr.bf16.mxu1 %v4247_v2 }
0x120c   :  { %v1909_v48 = vpop.f32.mrb[52].mxu0 }
0x120d   :  { %v1910_v49 = vadd.f32 %v3580_v47, %v1909_v48  ;;  %v3972_v50 = vpop.f32.mrb[53].mxu0 }
0x120e   :  { %v1912_v51 = vpop.f32.mrb[54].mxu0  ;;  %v1955_v52 = vpop.f32.mrb[64].mxu1 }
0x120f   :  { %v1956_v53 = vadd.f32 %v3580_v47, %v1955_v52  ;;  %v3973_v54 = vpop.f32.mrb[55].mxu0  ;;  %v3978_v55 = vpop.f32.mrb[65].mxu1  ;;  %v1961_v56 = vsel %vm398_vm7, %v1910_v49, -inf  ;;  %v2268_v47 = vsel %vm144_vm1, %v4158_v46, 0 }
0x1210   :  { %v1958_v57 = vpop.f32.mrb[66].mxu1  ;;  %1962 = vmax.xlane.f32.xlu1 %v1961_v56  ;;  %v4159_v56 = vld [vmem:[%s4987_s3 + $0x48] sm:$0xff]  }
0x1211   :  { %v3979_v58 = vpop.f32.mrb[67].mxu1  ;;  %v1964_v59 = vsel %vm398_vm7, %v1956_v53, -inf  ;;  %v2271_v57 = vsel %vm144_vm1, %v4159_v56, 0 }
0x1212   :  { %1965 = vmax.xlane.f32.xlu0 %v1964_v59  ;;  %v4160_v58 = vld [vmem:[%s4987_s3 + $0x50] sm:$0xff]  }
0x1213   :  { %v2274_v59 = vsel %vm144_vm1, %v4160_v58, 0 }
0x129d   :  { %v1963_v60 = vpop.xlane.xlu1 %1962 }
0x129e   :  { %v1967_v61 = vsub.f32 %v1910_v49, %v1963_v60  ;;  %v4161_v60 = vld [vmem:[%s4987_s3 + $0x58] sm:$0xff]  }
0x129f   :  { %v1966_v62 = vpop.xlane.xlu0 %1965 }
0x12a0   :  { %v1969_v63 = vmul.f32 1.442695, %v1967_v61  ;;  %v1968_v0 = vsub.f32 %v1956_v53, %v1966_v62  ;;  %v2277_v61 = vsel %vm144_vm1, %v4161_v60, 0 }
0x12a2   :  { %4202 = vpow2.f32 %v1969_v63  ;;  %v1971_v1 = vmul.f32 1.442695, %v1968_v0 }
0x12a4   :  { %4204 = vpow2.f32 %v1971_v1 }
0x12ac   :  { %v4203_v3 = vpop.eup %4202 }
0x12ad   :  { %v1973_v5 = vsel %vm398_vm7, %v4203_v3, 0.0 }
0x12ae   :  { %v4205_v6 = vpop.eup %4204  ;;  %1974 = vadd.xlane.f32.xlu1 %v1973_v5 }
0x12af   :  { %v1976_v9 = vsel %vm398_vm7, %v4205_v6, 0.0 }
0x12b0   :  { %1977 = vadd.xlane.f32.xlu0 %v1976_v9  ;;  %v3593_v9 = vld [vmem:[%s4988_s4 + $0x10] ss:$0 sm:$0xff] }
0x133b   :  { %v1975_v11 = vpop.xlane.xlu1 %1974 }
0x133c   :  { %4206 = vrcp.f32 %v1975_v11 }
0x133d   :  { %v1978_v12 = vpop.xlane.xlu0 %1977 }
0x133e   :  { %4208 = vrcp.f32 %v1978_v12 }
0x1346   :  { %v4207_v13 = vpop.eup %4206 }
0x1347   :  { %v1981_v14 = vmul.f32 %v4207_v13, %v4203_v3 }
0x1348   :  { %v4209_v40 = vpop.eup %4208 }
0x1349   :  { %v1982_v15 = vmul.f32 %v4209_v40, %v4205_v6  ;;  %v1983_v16 = vpack.c.bf16 %v1981_v14, %v1981_v14  ;;  %v3594_v40 = vld [vmem:[%s4988_s4 + $0x11] ss:$0 sm:$0xff] }
0x134b   :  { %3983 = vmatmul.mubr.msk.bf16.vlgmr.msra.gmra.mrb[56].mxu0 %vm398_vm7, %v1983_v16  ;;  %v1984_v22 = vpack.c.bf16 %v1982_v15, %v1982_v15 }
0x134c   :  { %3993 = vmatpush3.bf16.msra.mxu0 %v4157_v20  ;;  %3994 = vmatprep.mubr.msk.bf16.mxu0 %vm4248_vm0, %v4247_v2 }
0x134d   :  { %3989 = vmatmul.mubr.msk.bf16.vlgmr.msra.gmra.mrb[68].mxu1 %vm398_vm7, %v1984_v22  ;;  %4004 = vmatprep.subr.bf16.mxu0 %v4247_v2  ;;  %v4162_v22 = vld [vmem:[%s4987_s3 + $0x60] sm:$0xff]  }
0x134e   :  { %3999 = vmatpush3.bf16.msra.mxu1 %v4156_v17  ;;  %4000 = vmatprep.mubr.msk.bf16.mxu1 %vm4248_vm0, %v4247_v2 }
0x134f   :  { %4016 = vmatprep.subr.bf16.mxu1 %v4247_v2 }
0x1355   :  { %4001 = vmatmul.mubr.msk.bf16.vlgmr.msra.gmra.mrb[72].mxu1 %vm305_vm5, %v1688_v8 }
0x1356   :  { %4024 = vmatprep.mubr.msk.bf16.mxu1 %vm4248_vm0, %v4247_v2  ;;  %4017 = vmatpush3.bf16.msra.mxu1 %v4162_v22 }
0x1357   :  { %4018 = vmatprep.subr.bf16.mxu1 %v4247_v2 }
0x141e   :  { %v2027_v18 = vpop.f32.mrb[56].mxu0 }
0x141f   :  { %v3984_v19 = vpop.f32.mrb[57].mxu0 }
0x1420   :  { %v2030_v21 = vpop.f32.mrb[58].mxu0  ;;  %v2073_v24 = vpop.f32.mrb[68].mxu1  ;;  %v4164_v19 = vld [vmem:[%s4987_s3 + $0x70] sm:$0xff]  }
0x1421   :  { %v2079_v25 = vpack.c.bf16 %v2073_v24, %v2027_v18  ;;  %v3985_v26 = vpop.f32.mrb[59].mxu0  ;;  %v3990_v27 = vpop.f32.mrb[69].mxu1  ;;  %v4163_v18 = vld [vmem:[%s4987_s3 + $0x68] sm:$0xff]   ;;  %v4165_v21 = vld [vmem:[%s4987_s3 + $0x78] sm:$0xff]   ;;  %v3604_v24 = vld [vmem:[%s4988_s4 + $0x15] ss:$0 sm:$0xff] }
0x1422   :  { %v2076_v28 = vpop.f32.mrb[70].mxu1  ;;  %4019 = vmatpush3.bf16.msra.mxu1 %v4163_v18 }
0x1423   :  { %v3991_v29 = vpop.f32.mrb[71].mxu1  ;;  %3995 = vmatmul.mubr.msk.bf16.vlgmr.msra.gmra.mrb[60].mxu0 %vm305_vm5, %v2079_v25  ;;  %4020 = vmatprep.subr.bf16.mxu1 %v4247_v2 }
0x1424   :  { %4012 = vmatprep.mubr.msk.bf16.mxu0 %vm4248_vm0, %v4247_v2  ;;  %4005 = vmatpush3.bf16.xpose.msra.mxu0 %v2268_v47 }
0x1425   :  { %4006 = vmatprep.subr.bf16.mxu0 %v4247_v2 }
0x1426   :  { %4021 = vmatpush3.bf16.msra.mxu1 %v4164_v19  ;;  %v3627_v19 = vld [vmem:[%s4988_s4 + $0x12] ss:$0 sm:$0xff] }
0x1427   :  { %4022 = vmatprep.subr.bf16.mxu1 %v4247_v2 }
0x1428   :  { %v2173_v4 = vpop.f32.mrb[72].mxu1 }
0x1429   :  { %v4002_v7 = vpop.f32.mrb[73].mxu1 }
0x142a   :  { %v2176_v8 = vpop.f32.mrb[74].mxu1  ;;  %4023 = vmatpush3.bf16.msra.mxu1 %v4165_v21 }
0x142b   :  { %v4003_v30 = vpop.f32.mrb[75].mxu1  ;;  %4028 = vmatprep.subr.bf16.mxu1 %v4247_v2 }
0x142c   :  { %4007 = vmatpush3.bf16.xpose.msra.mxu0 %v2271_v57 }
0x142d   :  { %4008 = vmatprep.subr.bf16.mxu0 %v4247_v2 }
0x1434   :  { %4009 = vmatpush3.bf16.xpose.msra.mxu0 %v2274_v59 }
0x1435   :  { %4010 = vmatprep.subr.bf16.mxu0 %v4247_v2 }
0x143c   :  { %4011 = vmatpush3.bf16.xpose.msra.mxu0 %v2277_v61 }
0x143d   :  { %4040 = vmatprep.subr.bf16.mxu0 %v4247_v2 }
0x14f6   :  { %v2123_v31 = vpop.f32.mrb[60].mxu0 }
0x14f7   :  { %v2174_v33 = vadd.f32 %v2173_v4, %v2123_v31  ;;  %v3996_v34 = vpop.f32.mrb[61].mxu0 }
0x14f8   :  { %v2126_v36 = vpop.f32.mrb[62].mxu0 }
0x14f9   :  { %v2185_v37 = vadd.f32 %v3590_v32, %v2174_v33  ;;  %v2177_v38 = vadd.f32 %v2176_v8, %v2126_v36  ;;  %v3997_v41 = vpop.f32.mrb[63].mxu0 }
0x14fb   :  { %v2186_v42 = vadd.f32 %v3590_v32, %v2177_v38  ;;  %v2187_v43 = vadd.f32 %v2185_v37, %v4568_v35 }
0x14fd   :  { %v2191_v23 = vsel %vm144_vm1, %v2187_v43, 0.0  ;;  %v2188_v44 = vadd.f32 %v2186_v42, %v4570_v39 }
0x14fe   :  { %2192 = vadd.xlane.f32.xlu1 %v2191_v23 }
0x14ff   :  { %v2194_v45 = vsel %vm144_vm1, %v2188_v44, 0.0 }
0x1500   :  { %2195 = vadd.xlane.f32.xlu0 %v2194_v45 }
0x158b   :  { %v2193_v48 = vpop.xlane.xlu1 %2192 }
0x158c   :  { %v2197_v49 = vmul.f32 0.03125, %v2193_v48 }
0x158d   :  { %v2196_v35 = vpop.xlane.xlu0 %2195 }
0x158e   :  { %v2199_v50 = vsub.f32 %v2187_v43, %v2197_v49  ;;  %v2198_v51 = vmul.f32 0.03125, %v2196_v35  ;;  %v3619_v49 = vld [vmem:[%s4988_s4 + $0x16] ss:$0 sm:$0xff] }
0x1590   :  { %v2200_v52 = vsub.f32 %v2188_v44, %v2198_v51  ;;  %v2201_v39 = vmul.f32 %v2199_v50, %v2199_v50 }
0x1592   :  { %v2203_v53 = vsel %vm144_vm1, %v2201_v39, 0.0  ;;  %v2202_v54 = vmul.f32 %v2200_v52, %v2200_v52 }
0x1593   :  { %2204 = vadd.xlane.f32.xlu1 %v2203_v53 }
0x1594   :  { %v2206_v55 = vsel %vm144_vm1, %v2202_v54, 0.0 }
0x1595   :  { %2207 = vadd.xlane.f32.xlu0 %v2206_v55 }
0x1620   :  { %v2205_v62 = vpop.xlane.xlu1 %2204 }
0x1621   :  { %v2209_v63 = vmul.f32 0.03125, %v2205_v62 }
0x1622   :  { %v2208_v0 = vpop.xlane.xlu0 %2207 }
0x1623   :  { %v2211_v1 = vadd.f32 1e-12, %v2209_v63  ;;  %v2210_v3 = vmul.f32 0.03125, %v2208_v0 }
0x1625   :  { %4210 = vrsqrt.f32 %v2211_v1  ;;  %v2212_v5 = vadd.f32 1e-12, %v2210_v3 }
0x1627   :  { %4212 = vrsqrt.f32 %v2212_v5 }
0x162f   :  { %v4211_v6 = vpop.eup %4210 }
0x1630   :  { %v2215_v11 = vmul.f32 %v4211_v6, %v2199_v50  ;;  %v2530_v6 = vld [vmem:[%s4990_s6] sm:$0x1] }
0x1631   :  { %v4213_v12 = vpop.eup %4212 }
0x1632   :  { %v2221_v13 = vmul.f32 %v3593_v9, %v2215_v11  ;;  %v2216_v14 = vmul.f32 %v4213_v12, %v2200_v52  ;;  %v2532_v11 = vld [vmem:[%s4990_s6 + $0x2] sm:$0x1] }
0x1633   :  { %v2657_v12 = vsel %vm144_vm1, %v2532_v11, 0 }
0x1634   :  { %v2222_v20 = vmul.f32 %v3593_v9, %v2216_v14  ;;  %v2227_v15 = vadd.f32 %v3594_v40, %v2221_v13  ;;  %v2555_v9 = vsel %vm144_vm1, %v2530_v6, 0 }
0x1636   :  { %v2228_v16 = vadd.f32 %v3594_v40, %v2222_v20 }
0x1638   :  { %v2229_v17 = vpack.c.bf16 %v2228_v16, %v2227_v15 }
0x163a   :  { %4013 = vmatmul.mubr.msk.bf16.vlgmr.msra.gmra.mrb[64].mxu0 %vm144_vm1, %v2229_v17  ;;  %v4249_v17 = vmov 1966171168  }
0x163b   :  { %4042 = vmatprep.mubr.msk.bf16.mxu0 %vm4248_vm0, %v4247_v2  ;;  %4041 = vmatpush3.bf16.xpose.msra.mxu0 %v2657_v12  ;;  %v2467_v22 = vunpack.c.l.s4 %v4249_v17 }
0x163c   :  { %4052 = vmatprep.subr.bf16.mxu0 %v4247_v2 }
0x170d   :  { %v2313_v25 = vpop.f32.mrb[64].mxu0 }
0x170e   :  { %v2314_v26 = vadd.f32 %v3604_v24, %v2313_v25  ;;  %v4014_v27 = vpop.f32.mrb[65].mxu0  ;;  %v2468_v25 = vunpack.c.0.s8 %v2467_v22 }
0x170f   :  { %v2316_v28 = vpop.f32.mrb[66].mxu0 }
0x1710   :  { %v2320_v29 = vmul.f32 %v2314_v26, %v2314_v26  ;;  %v2317_v4 = vadd.f32 %v3604_v24, %v2316_v28  ;;  %v4015_v7 = vpop.f32.mrb[67].mxu0 }
0x1712   :  { %v2322_v8 = vmul.f32 %v2320_v29, %v2314_v26  ;;  %v2321_v30 = vmul.f32 %v2317_v4, %v2317_v4  ;;  %v3628_v29 = vld [vmem:[%s4988_s4 + $0x13] ss:$0 sm:$0xff] }
0x1714   :  { %v2324_v31 = vmul.f32 0.044715, %v2322_v8  ;;  %v2323_v32 = vmul.f32 %v2321_v30, %v2317_v4 }
0x1716   :  { %v2326_v33 = vadd.f32 %v2324_v31, %v2314_v26  ;;  %v2325_v34 = vmul.f32 0.044715, %v2323_v32 }
0x1718   :  { %v2328_v36 = vmul.f32 0.7978846, %v2326_v33  ;;  %v2327_v37 = vadd.f32 %v2325_v34, %v2317_v4 }
0x171a   :  { %4214 = vtanh.f32 %v2328_v36  ;;  %v2329_v38 = vmul.f32 0.7978846, %v2327_v37 }
0x171c   :  { %4216 = vtanh.f32 %v2329_v38  ;;  %v2531_v38 = vld [vmem:[%s4990_s6 + $0x1] sm:$0x1] }
0x1724   :  { %v4215_v41 = vpop.eup %4214 }
0x1725   :  { %v2332_v42 = vadd.f32 1.0, %v4215_v41 }
0x1726   :  { %v4217_v43 = vpop.eup %4216 }
0x1727   :  { %v2334_v23 = vmul.f32 0.5, %v2332_v42  ;;  %v2333_v44 = vadd.f32 1.0, %v4217_v43  ;;  %v2534_v43 = vld [vmem:[%s4990_s6 + $0x4] sm:$0x1] }
0x1729   :  { %v2335_v45 = vmul.f32 0.5, %v2333_v44  ;;  %v2336_v46 = vmul.f32 %v2334_v23, %v2314_v26  ;;  %v2470_v26 = vshrl.u32 %v30_v10, 7 }
0x172b   :  { %v2337_v47 = vmul.f32 %v2335_v45, %v2317_v4  ;;  %v4796_v7 = vsub.s32 %v2468_v25, %v2470_v26  ;;  %v4800_v36 = vsub.s32 0, %v2470_v26  ;;  %v2606_v45 = vsel %vm144_vm1, %v2531_v38, 0  ;;  %v2539_v25 = vld [vmem:[%s4990_s6 + $0x9] sm:$0x1] }
0x172d   :  { %v2338_v48 = vpack.c.bf16 %v2337_v47, %v2336_v46 }
0x172f   :  { %4025 = vmatmul.mubr.msk.bf16.vlgmr.msra.gmra.mrb[76].mxu1 %vm77_vm4, %v2338_v48 }
0x1730   :  { %4030 = vmatprep.mubr.msk.bf16.mxu1 %vm4248_vm0, %v4247_v2  ;;  %4029 = vmatpush3.bf16.xpose.msra.mxu1 %v2555_v9 }
0x1731   :  { %4034 = vmatprep.subr.bf16.mxu1 %v4247_v2 }
0x1802   :  { %v2414_v35 = vpop.f32.mrb[76].mxu1 }
0x1803   :  { %v2415_v50 = vadd.f32 %v3619_v49, %v2414_v35  ;;  %v4026_v51 = vpop.f32.mrb[77].mxu1 }
0x1804   :  { %v2417_v52 = vpop.f32.mrb[78].mxu1 }
0x1805   :  { %v2418_v39 = vadd.f32 %v3619_v49, %v2417_v52  ;;  %v4027_v53 = vpop.f32.mrb[79].mxu1  ;;  %v2421_v54 = vadd.f32 %v2415_v50, %v2227_v15  ;;  %v2759_v49 = vsel %vm144_vm1, %v2534_v43, 0  ;;  %v2533_v52 = vld [vmem:[%s4990_s6 + $0x3] sm:$0x1] }
0x1806   :  { %v2536_v53 = vld [vmem:[%s4990_s6 + $0x6] sm:$0x1] }
0x1807   :  { %v2425_v55 = vsel %vm144_vm1, %v2421_v54, 0.0  ;;  %v2422_v56 = vadd.f32 %v2418_v39, %v2228_v16 }
0x1808   :  { %2426 = vadd.xlane.f32.xlu1 %v2425_v55 }
0x1809   :  { %v2428_v57 = vsel %vm144_vm1, %v2422_v56, 0.0 }
0x180a   :  { %2429 = vadd.xlane.f32.xlu0 %v2428_v57 }
0x1895   :  { %v2427_v58 = vpop.xlane.xlu1 %2426 }
0x1896   :  { %v2431_v59 = vmul.f32 0.03125, %v2427_v58 }
0x1897   :  { %v2430_v60 = vpop.xlane.xlu0 %2429 }
0x1898   :  { %v2433_v61 = vsub.f32 %v2421_v54, %v2431_v59  ;;  %v2432_v62 = vmul.f32 0.03125, %v2430_v60  ;;  %v2861_v60 = vsel %vm144_vm1, %v2536_v53, 0 }
0x189a   :  { %v2434_v63 = vsub.f32 %v2422_v56, %v2432_v62  ;;  %v2435_v0 = vmul.f32 %v2433_v61, %v2433_v61  ;;  %v2708_v56 = vsel %vm144_vm1, %v2533_v52, 0 }
0x189c   :  { %v2437_v1 = vsel %vm144_vm1, %v2435_v0, 0.0  ;;  %v2436_v3 = vmul.f32 %v2434_v63, %v2434_v63  ;;  %v2535_v0 = vld [vmem:[%s4990_s6 + $0x5] sm:$0x1] }
0x189d   :  { %2438 = vadd.xlane.f32.xlu1 %v2437_v1  ;;  %v2810_v9 = vsel %vm144_vm1, %v2535_v0, 0 }
0x189e   :  { %v2440_v5 = vsel %vm144_vm1, %v2436_v3, 0.0 }
0x189f   :  { %2441 = vadd.xlane.f32.xlu0 %v2440_v5  ;;  %v2538_v5 = vld [vmem:[%s4990_s6 + $0x8] sm:$0x1] }
0x192a   :  { %v2439_v13 = vpop.xlane.xlu1 %2438 }
0x192b   :  { %v2443_v14 = vmul.f32 0.03125, %v2439_v13  ;;  %v2963_v13 = vsel %vm144_vm1, %v2538_v5, 0 }
0x192c   :  { %v2442_v40 = vpop.xlane.xlu0 %2441 }
0x192d   :  { %v2445_v20 = vadd.f32 1e-12, %v2443_v14  ;;  %v2444_v15 = vmul.f32 0.03125, %v2442_v40 }
0x192f   :  { %4218 = vrsqrt.f32 %v2445_v20  ;;  %v2446_v16 = vadd.f32 1e-12, %v2444_v15  ;;  %v2537_v20 = vld [vmem:[%s4990_s6 + $0x7] sm:$0x1] }
0x1930   :  { %v2912_v22 = vsel %vm144_vm1, %v2537_v20, 0 }
0x1931   :  { %4220 = vrsqrt.f32 %v2446_v16  ;;  %v2540_v16 = vld [vmem:[%s4990_s6 + $0xa] sm:$0x1] }
0x1939   :  { %v4219_v18 = vpop.eup %4218 }
0x193a   :  { %v2449_v21 = vmul.f32 %v4219_v18, %v2433_v61 }
0x193b   :  { %v4221_v24 = vpop.eup %4220 }
0x193c   :  { %v2455_v27 = vmul.f32 %v3627_v19, %v2449_v21  ;;  %v2450_v28 = vmul.f32 %v4221_v24, %v2434_v63  ;;  %v3065_v21 = vsel %vm144_vm1, %v2540_v16, 0 }
0x193e   :  { %v2456_v4 = vmul.f32 %v3627_v19, %v2450_v28  ;;  %v2461_v8 = vadd.f32 %v3628_v29, %v2455_v27  ;;  %v2542_v27 = vld [vmem:[%s4990_s6 + $0xc] sm:$0x1] }
0x1940   :  { %v2462_v30 = vadd.f32 %v3628_v29, %v2456_v4  ;;  %v3014_v29 = vsel %vm144_vm1, %v2539_v25, 0 }
0x1942   :  { %v2463_v31 = vpack.c.bf16 %v2462_v30, %v2461_v8  ;;  %v3629_v32 = vpack.c.bf16 %v2462_v30, %v2462_v30  ;;  %v3167_v8 = vsel %vm144_vm1, %v2542_v27, 0 }
0x1944   :  { %v2472_v33 = vrot.slane %v2463_v31, %v4796_v7  ;;  %v2479_v34 = vrot.slane %v3629_v32, %v4796_v7  ;;  %v2541_v32 = vld [vmem:[%s4990_s6 + $0xb] sm:$0x1] }
0x1946   :  { %v2488_v10 = vrot.slane %v2472_v33, %v4796_v7  ;;  %v2480_v37 = vcombine.high %v2472_v33, %v2472_v33  ;;  %v2481_v23 = vcombine.high %v2479_v34, %v2479_v34  ;;  %v2495_v14 = vrot.slane %v2479_v34, %v4796_v7  ;;  %v2544_v34 = vld [vmem:[%s4990_s6 + $0xe] sm:$0x1] }
0x1948   :  { %v3630_v41 = vpack.i.b16 %v2488_v10, %v2488_v10  ;;  %v2502_v42 = vrot.slane %v2480_v37, %v4796_v7  ;;  %v2515_v47 = vunpack.i.h.s16 %v2488_v10  ;;  %v2510_v35 = vcombine.high %v2488_v10, %v2488_v10 }
0x1949   :  { %v4818_v50 = vrot.slane %v2481_v23, %v4796_v7  ;;  %v3642_v15 = vpack.i.b16 %v2495_v14, %v2495_v14  ;;  %v2523_v4 = vunpack.i.h.s16 %v2495_v14  ;;  %v2511_v30 = vcombine.high %v2495_v14, %v2495_v14  ;;  %v2543_v23 = vld [vmem:[%s4990_s6 + $0xd] sm:$0x1] }
0x194a   :  { %v2550_v44 = vrot.slane %v3630_v41, %v4800_v36  ;;  %v3633_v46 = vpack.i.b16 %v2502_v42, %v2502_v42  ;;  %v2597_v51 = vpack.i.b16 %v2515_v47, %v2515_v47  ;;  %v3636_v39 = vpack.i.b16 %v2510_v35, %v2510_v35 }
0x194b   :  { %v4833_v54 = vcombine.high %v4818_v50, %v4818_v50  ;;  %v2517_v57 = vunpack.i.h.s16 %v2502_v42  ;;  %v2512_v61 = vcombine.high %v2502_v42, %v2502_v42  ;;  %v2519_v11 = vunpack.i.h.s16 %v2510_v35  ;;  %v2545_v35 = vld [vmem:[%s4990_s6 + $0xf] sm:$0x1] }
0x194c   :  { %4031 = vmatmul.mubr.msk.bf16.vlgmr.msra.gmra.mrb[80].mxu1 %vm144_vm1, %v2550_v44  ;;  %v2652_v48 = vrot.slane %v3633_v46, %v4800_v36  ;;  %v2601_v55 = vrot.slane %v2597_v51, %v4800_v36  ;;  %v2754_v59 = vrot.slane %v3636_v39, %v4800_v36  ;;  %v2958_v19 = vrot.slane %v3642_v15, %v4800_v36 }
0x194d   :  { %4035 = vmatpush3.bf16.xpose.msra.mxu1 %v2606_v45  ;;  %4036 = vmatprep.mubr.msk.bf16.mxu1 %vm4248_vm0, %v4247_v2  ;;  %v2529_v58 = vunpack.i.h.s16 %v4833_v54  ;;  %v2699_v63 = vpack.i.b16 %v2517_v57, %v2517_v57  ;;  %v3639_v3 = vpack.i.b16 %v2512_v61, %v2512_v61  ;;  %v2801_v40 = vpack.i.b16 %v2519_v11, %v2519_v11 }
0x194e   :  { %4043 = vmatmul.mubr.msk.bf16.vlgmr.msra.gmra.mrb[68].mxu0 %vm144_vm1, %v2652_v48  ;;  %4046 = vmatprep.subr.bf16.mxu1 %v4247_v2  ;;  %v2521_v18 = vunpack.i.h.s16 %v2512_v61  ;;  %v3645_v26 = vpack.i.b16 %v4818_v50, %v4818_v50  ;;  %v3005_v31 = vpack.i.b16 %v2523_v4, %v2523_v4  ;;  %v3648_v33 = vpack.i.b16 %v2511_v30, %v2511_v30 }
0x194f   :  { %4053 = vmatpush3.bf16.xpose.msra.mxu0 %v2759_v49  ;;  %4054 = vmatprep.mubr.msk.bf16.mxu0 %vm4248_vm0, %v4247_v2  ;;  %v4843_v62 = vpack.i.b16 %v2529_v58, %v2529_v58  ;;  %v2703_v6 = vrot.slane %v2699_v63, %v4800_v36  ;;  %v2856_v12 = vrot.slane %v3639_v3, %v4800_v36  ;;  %v3116_v37 = vsel %vm144_vm1, %v2541_v32, 0 }
0x1950   :  { %4064 = vmatprep.subr.bf16.mxu0 %v4247_v2  ;;  %v2805_v17 = vrot.slane %v2801_v40, %v4800_v36  ;;  %v2903_v24 = vpack.i.b16 %v2521_v18, %v2521_v18  ;;  %v3060_v7 = vrot.slane %v3645_v26, %v4800_v36  ;;  %v3009_v10 = vrot.slane %v3005_v31, %v4800_v36 }
0x1951   :  { %v3315_v1 = vrot.slane %v4843_v62, %v4800_v36  ;;  %v2525_v38 = vunpack.i.h.s16 %v4818_v50  ;;  %v3162_v41 = vrot.slane %v3648_v33, %v4800_v36  ;;  %v3269_v42 = vsel %vm144_vm1, %v2544_v34, 0 }
0x1952   :  { %v2907_v28 = vrot.slane %v2903_v24, %v4800_v36  ;;  %v3651_v44 = vpack.i.b16 %v4833_v54, %v4833_v54  ;;  %v3218_v46 = vsel %vm144_vm1, %v2543_v23, 0  ;;  %v2527_v47 = vunpack.i.h.s16 %v2511_v30 }
0x1953   :  { %v3107_v43 = vpack.i.b16 %v2525_v38, %v2525_v38  ;;  %v3320_v51 = vsel %vm144_vm1, %v2545_v35, 0 }
0x1954   :  { %4037 = vmatmul.mubr.msk.bf16.vlgmr.msra.gmra.mrb[84].mxu1 %vm144_vm1, %v2601_v55  ;;  %v3264_v48 = vrot.slane %v3651_v44, %v4800_v36  ;;  %v3209_v49 = vpack.i.b16 %v2527_v47, %v2527_v47 }
0x1955   :  { %4047 = vmatpush3.bf16.xpose.msra.mxu1 %v2708_v56  ;;  %4048 = vmatprep.mubr.msk.bf16.mxu1 %vm4248_vm0, %v4247_v2  ;;  %v3111_v45 = vrot.slane %v3107_v43, %v4800_v36 }
0x1956   :  { %4055 = vmatmul.mubr.msk.bf16.vlgmr.msra.gmra.mrb[72].mxu0 %vm144_vm1, %v2754_v59  ;;  %4058 = vmatprep.subr.bf16.mxu1 %v4247_v2  ;;  %v3213_v50 = vrot.slane %v3209_v49, %v4800_v36 }
0x1957   :  { %4065 = vmatpush3.bf16.xpose.msra.mxu0 %v2861_v60  ;;  %4066 = vmatprep.mubr.msk.bf16.mxu0 %vm4248_vm0, %v4247_v2 }
0x1958   :  { %4076 = vmatprep.subr.bf16.mxu0 %v4247_v2 }
0x195c   :  { %4049 = vmatmul.mubr.msk.bf16.vlgmr.msra.gmra.mrb[88].mxu1 %vm144_vm1, %v2703_v6 }
0x195d   :  { %4059 = vmatpush3.bf16.xpose.msra.mxu1 %v2810_v9  ;;  %4060 = vmatprep.mubr.msk.bf16.mxu1 %vm4248_vm0, %v4247_v2 }
0x195e   :  { %4067 = vmatmul.mubr.msk.bf16.vlgmr.msra.gmra.mrb[76].mxu0 %vm144_vm1, %v2856_v12  ;;  %4070 = vmatprep.subr.bf16.mxu1 %v4247_v2 }
0x195f   :  { %4077 = vmatpush3.bf16.xpose.msra.mxu0 %v2963_v13  ;;  %4078 = vmatprep.mubr.msk.bf16.mxu0 %vm4248_vm0, %v4247_v2 }
0x1960   :  { %4088 = vmatprep.subr.bf16.mxu0 %v4247_v2 }
0x1964   :  { %4061 = vmatmul.mubr.msk.bf16.vlgmr.msra.gmra.mrb[92].mxu1 %vm144_vm1, %v2805_v17 }
0x1965   :  { %4071 = vmatpush3.bf16.xpose.msra.mxu1 %v2912_v22  ;;  %4072 = vmatprep.mubr.msk.bf16.mxu1 %vm4248_vm0, %v4247_v2 }
0x1966   :  { %4079 = vmatmul.mubr.msk.bf16.vlgmr.msra.gmra.mrb[80].mxu0 %vm144_vm1, %v2958_v19  ;;  %4082 = vmatprep.subr.bf16.mxu1 %v4247_v2 }
0x1967   :  { %4089 = vmatpush3.bf16.xpose.msra.mxu0 %v3065_v21  ;;  %4090 = vmatprep.mubr.msk.bf16.mxu0 %vm4248_vm0, %v4247_v2 }
0x1968   :  { %4100 = vmatprep.subr.bf16.mxu0 %v4247_v2 }
0x196c   :  { %4073 = vmatmul.mubr.msk.bf16.vlgmr.msra.gmra.mrb[96].mxu1 %vm144_vm1, %v2907_v28 }
0x196d   :  { %4083 = vmatpush3.bf16.xpose.msra.mxu1 %v3014_v29  ;;  %4084 = vmatprep.mubr.msk.bf16.mxu1 %vm4248_vm0, %v4247_v2 }
0x196e   :  { %4091 = vmatmul.mubr.msk.bf16.vlgmr.msra.gmra.mrb[84].mxu0 %vm144_vm1, %v3060_v7  ;;  %4094 = vmatprep.subr.bf16.mxu1 %v4247_v2 }
0x196f   :  { %4101 = vmatpush3.bf16.xpose.msra.mxu0 %v3167_v8  ;;  %4102 = vmatprep.mubr.msk.bf16.mxu0 %vm4248_vm0, %v4247_v2 }
0x1970   :  { %4112 = vmatprep.subr.bf16.mxu0 %v4247_v2 }
0x1974   :  { %4085 = vmatmul.mubr.msk.bf16.vlgmr.msra.gmra.mrb[100].mxu1 %vm144_vm1, %v3009_v10 }
0x1975   :  { %4095 = vmatpush3.bf16.xpose.msra.mxu1 %v3116_v37  ;;  %4096 = vmatprep.mubr.msk.bf16.mxu1 %vm4248_vm0, %v4247_v2 }
0x1976   :  { %4103 = vmatmul.mubr.msk.bf16.vlgmr.msra.gmra.mrb[88].mxu0 %vm144_vm1, %v3162_v41  ;;  %4106 = vmatprep.subr.bf16.mxu1 %v4247_v2 }
0x1977   :  { %4113 = vmatpush3.bf16.xpose.msra.mxu0 %v3269_v42  ;;  %4114 = vmatprep.mubr.msk.bf16.mxu0 %vm4248_vm0, %v4247_v2 }
0x197c   :  { %4097 = vmatmul.mubr.msk.bf16.vlgmr.msra.gmra.mrb[104].mxu1 %vm144_vm1, %v3111_v45 }
0x197d   :  { %4107 = vmatpush3.bf16.xpose.msra.mxu1 %v3218_v46  ;;  %4108 = vmatprep.mubr.msk.bf16.mxu1 %vm4248_vm0, %v4247_v2 }
0x197e   :  { %4115 = vmatmul.mubr.msk.bf16.vlgmr.msra.gmra.mrb[92].mxu0 %vm144_vm1, %v3264_v48  ;;  %4118 = vmatprep.subr.bf16.mxu1 %v4247_v2 }
0x1984   :  { %4109 = vmatmul.mubr.msk.bf16.vlgmr.msra.gmra.mrb[108].mxu1 %vm144_vm1, %v3213_v50 }
0x1985   :  { %4119 = vmatpush3.bf16.xpose.msra.mxu1 %v3320_v51  ;;  %4120 = vmatprep.mubr.msk.bf16.mxu1 %vm4248_vm0, %v4247_v2  ;;  %vm3442_vm0 = vcmask 9216  }
0x198c   :  { %4121 = vmatmul.mubr.msk.bf16.vlgmr.msra.gmra.mrb[112].mxu1 %vm144_vm1, %v3315_v1 }
0x1a1f   :  { %v2591_v52 = vpop.f32.mrb[80].mxu1 }
0x1a20   :  { %v4032_v39 = vpop.f32.mrb[81].mxu1 }
0x1a21   :  { %v2594_v53 = vpop.f32.mrb[82].mxu1  ;;  %v2693_v54 = vpop.f32.mrb[68].mxu0 }
0x1a22   :  { %v4033_v55 = vpop.f32.mrb[83].mxu1  ;;  %v4044_v56 = vpop.f32.mrb[69].mxu0  ;;  %v3381_v63 = vrot.slane %v2693_v54, 6 }
0x1a23   :  { %v2696_v57 = vpop.f32.mrb[70].mxu0 }
0x1a24   :  { %v4045_v58 = vpop.f32.mrb[71].mxu0 }
0x1a27   :  { %v2642_v59 = vpop.f32.mrb[84].mxu1 }
0x1a28   :  { %v3378_v60 = vrot.slane %v2642_v59, 7  ;;  %v4038_v61 = vpop.f32.mrb[85].mxu1 }
0x1a29   :  { %v2645_v2 = vpop.f32.mrb[86].mxu1  ;;  %v2795_v0 = vpop.f32.mrb[72].mxu0 }
0x1a2a   :  { %v3380_v36 = vsel %vm3379_vm8, %v3378_v60, %v2591_v52  ;;  %v4039_v62 = vpop.f32.mrb[87].mxu1  ;;  %v4056_v1 = vpop.f32.mrb[73].mxu0  ;;  %v3387_v13 = vrot.slane %v2795_v0, 4 }
0x1a2b   :  { %v2798_v3 = vpop.f32.mrb[74].mxu0  ;;  %v3383_v5 = vsel %vm3382_vm9, %v3381_v63, %v3380_v36 }
0x1a2c   :  { %v4057_v6 = vpop.f32.mrb[75].mxu0 }
0x1a2f   :  { %v2744_v9 = vpop.f32.mrb[88].mxu1 }
0x1a30   :  { %v3384_v11 = vrot.slane %v2744_v9, 5  ;;  %v4050_v12 = vpop.f32.mrb[89].mxu1 }
0x1a31   :  { %v2747_v14 = vpop.f32.mrb[90].mxu1  ;;  %v2897_v40 = vpop.f32.mrb[76].mxu0 }
0x1a32   :  { %v3386_v20 = vsel %vm3385_vm10, %v3384_v11, %v3383_v5  ;;  %v4051_v15 = vpop.f32.mrb[91].mxu1  ;;  %v4068_v16 = vpop.f32.mrb[77].mxu0  ;;  %v3393_v25 = vrot.slane %v2897_v40, 2 }
0x1a33   :  { %v2900_v17 = vpop.f32.mrb[78].mxu0  ;;  %v3389_v22 = vsel %vm3388_vm11, %v3387_v13, %v3386_v20 }
0x1a34   :  { %v4069_v18 = vpop.f32.mrb[79].mxu0 }
0x1a37   :  { %v2846_v19 = vpop.f32.mrb[92].mxu1 }
0x1a38   :  { %v3390_v21 = vrot.slane %v2846_v19, 3  ;;  %v4062_v24 = vpop.f32.mrb[93].mxu1 }
0x1a39   :  { %v2849_v26 = vpop.f32.mrb[94].mxu1  ;;  %v2999_v27 = vpop.f32.mrb[80].mxu0 }
0x1a3a   :  { %v3392_v28 = vsel %vm3391_vm12, %v3390_v21, %v3389_v22  ;;  %v4063_v29 = vpop.f32.mrb[95].mxu1  ;;  %v4080_v4 = vpop.f32.mrb[81].mxu0 }
0x1a3b   :  { %v3002_v7 = vpop.f32.mrb[82].mxu0  ;;  %v3395_v8 = vsel %vm3394_vm13, %v3393_v25, %v3392_v28 }
0x1a3c   :  { %v4081_v30 = vpop.f32.mrb[83].mxu0 }
0x1a3f   :  { %v2948_v31 = vpop.f32.mrb[96].mxu1 }
0x1a40   :  { %v3396_v32 = vrot.slane %v2948_v31, 1  ;;  %v4074_v33 = vpop.f32.mrb[97].mxu1 }
0x1a41   :  { %v2951_v34 = vpop.f32.mrb[98].mxu1  ;;  %v3101_v10 = vpop.f32.mrb[84].mxu0 }
0x1a42   :  { %v3398_v37 = vsel %vm3397_vm14, %v3396_v32, %v3395_v8  ;;  %v4075_v38 = vpop.f32.mrb[99].mxu1  ;;  %v4092_v41 = vpop.f32.mrb[85].mxu0  ;;  %v3401_v46 = vrot.slane %v3101_v10, 6  ;;  %v3654_v8 = vld [vmem:[%s4988_s4 + $0xd] ss:$0 sm:$0xff] }
0x1a43   :  { %v3104_v42 = vpop.f32.mrb[86].mxu0  ;;  %v3416_v36 = vsel %vm3415_vm15, %v3398_v37, 0.0 }
0x1a44   :  { %v4093_v43 = vpop.f32.mrb[87].mxu0  ;;  %v3417_v9 = vrot.slane %v3416_v36, 4 }
0x1a46   :  { %v3418_v14 = vadd.f32 %v3417_v9, %v3416_v36 }
0x1a47   :  { %v3050_v23 = vpop.f32.mrb[100].mxu1 }
0x1a48   :  { %v3399_v44 = vrot.slane %v3050_v23, 7  ;;  %v4086_v45 = vpop.f32.mrb[101].mxu1  ;;  %v3419_v17 = vrot.slane %v3418_v14, 2 }
0x1a49   :  { %v3053_v47 = vpop.f32.mrb[102].mxu1  ;;  %v3203_v48 = vpop.f32.mrb[88].mxu0 }
0x1a4a   :  { %v3400_v49 = vsel %vm3379_vm8, %v3399_v44, %v2999_v27  ;;  %v4087_v35 = vpop.f32.mrb[103].mxu1  ;;  %v4104_v50 = vpop.f32.mrb[89].mxu0  ;;  %v3405_v56 = vrot.slane %v3203_v48, 4  ;;  %v3420_v24 = vadd.f32 %v3419_v17, %v3418_v14 }
0x1a4b   :  { %v3206_v51 = vpop.f32.mrb[90].mxu0  ;;  %v3402_v52 = vsel %vm3382_vm9, %v3401_v46, %v3400_v49 }
0x1a4c   :  { %v4105_v39 = vpop.f32.mrb[91].mxu0  ;;  %v3421_v27 = vrot.slane %v3420_v24, 1 }
0x1a4e   :  { %v3422_v4 = vadd.f32 %v3421_v27, %v3420_v24 }
0x1a4f   :  { %v3152_v53 = vpop.f32.mrb[104].mxu1 }
0x1a50   :  { %v3403_v54 = vrot.slane %v3152_v53, 5  ;;  %v4098_v55 = vpop.f32.mrb[105].mxu1  ;;  %v3435_v31 = vadd.f32 %v3654_v8, %v3422_v4 }
0x1a51   :  { %v3155_v57 = vpop.f32.mrb[106].mxu1  ;;  %v3305_v58 = vpop.f32.mrb[92].mxu0 }
0x1a52   :  { %v3404_v59 = vsel %vm3385_vm10, %v3403_v54, %v3402_v52  ;;  %v4099_v60 = vpop.f32.mrb[107].mxu1  ;;  %v4116_v61 = vpop.f32.mrb[93].mxu0  ;;  %v3409_v5 = vrot.slane %v3305_v58, 2 }
0x1a53   :  { %v3308_v63 = vpop.f32.mrb[94].mxu0  ;;  %v3406_v2 = vsel %vm3388_vm11, %v3405_v56, %v3404_v59 }
0x1a54   :  { %v4117_v0 = vpop.f32.mrb[95].mxu0 }
0x1a57   :  { %v3254_v62 = vpop.f32.mrb[108].mxu1 }
0x1a58   :  { %v3407_v1 = vrot.slane %v3254_v62, 3  ;;  %v4110_v3 = vpop.f32.mrb[109].mxu1 }
0x1a59   :  { %v3257_v6 = vpop.f32.mrb[110].mxu1 }
0x1a5a   :  { %v3408_v11 = vsel %vm3391_vm12, %v3407_v1, %v3406_v2  ;;  %v4111_v12 = vpop.f32.mrb[111].mxu1 }
0x1a5b   :  { %v3410_v13 = vsel %vm3394_vm13, %v3409_v5, %v3408_v11 }
0x1a5f   :  { %v3356_v40 = vpop.f32.mrb[112].mxu1 }
0x1a60   :  { %v3411_v20 = vrot.slane %v3356_v40, 1  ;;  %v4122_v15 = vpop.f32.mrb[113].mxu1 }
0x1a61   :  { %v3359_v16 = vpop.f32.mrb[114].mxu1 }
0x1a62   :  { %v3412_v22 = vsel %vm3397_vm14, %v3411_v20, %v3410_v13  ;;  %v4123_v18 = vpop.f32.mrb[115].mxu1 }
0x1a63   :  { %v3423_v19 = vsel %vm3415_vm15, %v3412_v22, 0.0 }
0x1a64   :  { %v3424_v21 = vrot.slane %v3423_v19, 4 }
0x1a66   :  { %v3425_v25 = vadd.f32 %v3424_v21, %v3423_v19 }
0x1a68   :  { %v3426_v26 = vrot.slane %v3425_v25, 2 }
0x1a6a   :  { %v3427_v28 = vadd.f32 %v3426_v26, %v3425_v25 }
0x1a6c   :  { %v3428_v29 = vrot.slane %v3427_v28, 1 }
0x1a6e   :  { %v3429_v7 = vadd.f32 %v3428_v29, %v3427_v28 }
0x1a70   :  { %v3436_v30 = vadd.f32 %v3654_v8, %v3429_v7 }
0x1a72   :  { %v3439_v32 = vrot.slane %v3436_v30, 7 }
0x1a74   :  { %v3440_v33 = vsel %vm3379_vm8, %v3439_v32, %v3435_v31 }
0x1a75   :  { %3443 = vst.msk [vmem:[#allocation2] sm:$0x3] %vm3442_vm0, %v3440_v33 }
0x1a76   :  { %4233 = shalt.err (!%p4230_p4)
}
0x1a77   :  { %s4234_s4 = scalar_lea.hbm %s4991_s7, 32 }
0x1a78   :  { %p4235_p5 = scmp.ne.s32.totalorder %s4991_s7, %s4234_s4  ;;  %p4238_p6 = scmp.lt.u32.totalorder %s4234_s4, %s4991_s7 }
0x1a7a   :  { %p4240_p7 = pnand %p4238_p6, %p4235_p5 }
0x1a7c   :  { %4243 = shalt.err (!%p4240_p7)
}
0x1a7d   :  { %3453 = dma.vmem_to_hbm [thread:$0]  %s3451_s12, 32, %s4991_s7, [#allocation3]  }
0x1a7e   :  { %4244 = dma.done.wait [#allocation3], 32  }
0x1a7f   :  { %4245 = vsyncadd [#allocation3], 4294967264 }
0x1a80   :  { %3457 = vsyncpa [#allocation3], 1 }

</bundles_post_ra>
